<compile_context>
chip_gen: v7x
topology: tpu7x:2x2x1
jax: 0.10.0
libtpu: 0.0.40
codegen_flags: <defaults>
</compile_context>

<pallas_src>
import functools

import jax
import jax.numpy as jnp
from jax import lax
from jax.experimental import pallas as pl
from jax.experimental.pallas import tpu as pltpu

# ----------------------------- configuration --------------------------------
N_VOCAB = 128        # dec_tknzr_cfg.n_vocab
D_EMB = 32           # model_cfg.dec_d_emb
D_HID = 32           # model_cfg.dec_d_hid
N_LAYER = 2          # model_cfg.dec_n_layer
ENC_D_HID = 16       # model_cfg.enc_d_hid
IS_BIDIR = 1         # model_cfg.is_bidir
H_ENC = ENC_D_HID * (IS_BIDIR + 1)     # 32
B = 2
S = 8


# ------------------------------- the kernel ---------------------------------
def rnn_dec_kernel(
    tgt_ref,     # (S*Bp, 1) int32   time-major token ids (row = t*Bp + b)
    enc_ref,     # (Bp, H_ENC)
    wc1_ref,     # (H_ENC, L*H)      enc_to_hid W1^T
    wc2_ref,     # (L*H, L*H)        enc_to_hid W2^T
    tbl2_ref,    # (N_VOCAB, L*H)    emb->MLP->Wih0^T baked table (one-hot matmul)
    wave_ref,    # (L*H, L*H)        wavefront block matrix
    wh1p_ref,    # (L*H, D_HID)      hid_to_emb W1^T zero-padded (selects last layer)
    wout_ref,    # (D_HID, N_VOCAB)  fused (emb_w @ wh2)^T
    bias_ref,    # (8, 128)          packed biases
    out_ref,     # (S*Bp, N_VOCAB)   time-major logits
    xw0_ref,     # VMEM scratch (S*Bp, L*H)
    *, batch, batch_real, seq, n_layer, d_hid, n_vocab,
):
    f32 = jnp.float32
    lh = n_layer * d_hid
    sb = seq * batch

    biases = bias_ref[...]
    bc1 = biases[0:1, :lh]
    bc2 = biases[1:2, :lh]
    bwave = biases[2:3, :lh]

    # ---- enc_to_hid: Linear -> ReLU -> Linear -> ReLU (weights pre-transposed)
    h0 = jnp.maximum(
        jnp.dot(enc_ref[...], wc1_ref[...], preferred_element_type=f32) + bc1, 0.0)
    h0 = jnp.maximum(
        jnp.dot(h0, wc2_ref[...], preferred_element_type=f32) + bc2, 0.0)   # (Bp, L*H)

    # torch (B, L*H).reshape(L, -1, H) semantics, using the REAL batch size:
    #   h_cat[b, l*H:(l+1)*H] = initial hidden of layer l for batch row b.
    rows = []
    for b in range(batch_real):
        pieces = []
        for l in range(n_layer):
            off = (l * batch_real + b) * d_hid
            r, c = off // lh, off % lh          # never straddles a row (H | L*H)
            pieces.append(h0[r:r + 1, c:c + d_hid])
        rows.append(jnp.concatenate(pieces, axis=1))
    if batch > batch_real:
        rows.append(jnp.zeros((batch - batch_real, lh), f32))
    h_cat = jnp.concatenate(rows, axis=0)                                   # (Bp, L*H)

    # ---- fused embedding gather: one-hot MXU matmul against the baked table,
    #      with the RNN bias folded in; staged to VMEM so each wave does a static
    #      sublane-aligned load instead of slicing a live vreg value.
    vocab_iota = lax.broadcasted_iota(jnp.int32, (sb, n_vocab), 1)
    one_hot = (vocab_iota == tgt_ref[...]).astype(f32)                      # (S*Bp, V)
    xw0_ref[...] = (
        jnp.dot(one_hot, tbl2_ref[...], preferred_element_type=f32) + bwave)

    # ---- hoisted loop invariants (JAX does not CSE broadcast_in_dim)
    wave_w = wave_ref[...]
    wh1p = wh1p_ref[...]
    wout = wout_ref[...]
    bwave_b = jnp.broadcast_to(bwave, (batch, lh))
    bh1_b = jnp.broadcast_to(biases[3:4, :d_hid], (batch, d_hid))
    bout_b = jnp.broadcast_to(biases[4:5, :n_vocab], (batch, n_vocab))
    lane_iota = lax.broadcasted_iota(jnp.int32, (batch, lh), 1)

    # ---- wavefront over the layer stack: wave w advances layer l at t = w - l.
    # NOTE: a v5e-specific variant could hold `wave_w` resident in the MXU weight
    # registers via pltpu.matmul_push_rhs / matmul_acc_lhs / matmul_pop.
    for w in range(seq + n_layer - 1):
        pre = jnp.dot(h_cat, wave_w, preferred_element_type=f32)            # (Bp, L*H)
        if w < seq:
            pre = pre + xw0_ref[w * batch:(w + 1) * batch, :]               # bias folded
        else:
            pre = pre + bwave_b
        new = jnp.tanh(pre)
        if w < n_layer - 1:
            # upper layers not started yet: keep their h0 blocks (VPU select).
            h_cat = jnp.where(lane_iota < (w + 1) * d_hid, new, h_cat)
        else:
            # trailing inactive lower-layer blocks are never read again -> no gate.
            h_cat = new
        t_out = w - (n_layer - 1)
        if 0 <= t_out < seq:
            # per-wave fused hid_to_emb + tied projection; wh1p zero-padding picks
            # the last-layer lanes, so no cross-lane slice on the critical path.
            y = jnp.maximum(
                jnp.dot(h_cat, wh1p, preferred_element_type=f32) + bh1_b, 0.0)
            out_ref[t_out * batch:(t_out + 1) * batch, :] = (
                jnp.dot(y, wout, preferred_element_type=f32) + bout_b)


# --------------------- load-time parameter preparation -----------------------
def prepare_params(p):
    """One-time algebraic fusion / re-layout of the PyTorch-format parameters."""
    f32 = jnp.float32
    lh = N_LAYER * D_HID
    last = (N_LAYER - 1) * D_HID
    # (1) embedding + emb_to_hid MLP baked into a per-token table, then fused with
    #     layer-0 W_ih^T and zero-padded to L*H lanes -> one-hot matmul yields the
    #     layer-0 input contribution directly.
    tbl = jnp.maximum(p["emb_w"] @ p["we1"].T + p["be1"], 0.0)
    tbl = jnp.maximum(tbl @ p["we2"].T + p["be2"], 0.0)                      # (V, H)
    tbl2 = jnp.zeros((N_VOCAB, lh), f32).at[:, :D_HID].set(tbl @ p["wih"][0].T)
    # (2) pre-transposed enc_to_hid weights
    wc1_t = p["wc1"].T.astype(f32)
    wc2_t = p["wc2"].T.astype(f32)
    # (3) wavefront block matrix: diag blocks = Whh_l^T, superdiag = Wih_{l+1}^T
    wave = jnp.zeros((lh, lh), f32)
    for l in range(N_LAYER):
        wave = wave.at[l * D_HID:(l + 1) * D_HID,
                       l * D_HID:(l + 1) * D_HID].set(p["whh"][l].T)
        if l + 1 < N_LAYER:
            wave = wave.at[l * D_HID:(l + 1) * D_HID,
                           (l + 1) * D_HID:(l + 2) * D_HID].set(p["wih"][l + 1].T)
    bwave = jnp.concatenate([p["bih"][l] + p["bhh"][l] for l in range(N_LAYER)],
                            axis=1)                                          # (1, L*H)
    # (4) hid_to_emb W1^T zero-padded so the projection selects the last layer
    wh1p = jnp.zeros((lh, D_HID), f32).at[last:last + D_HID, :].set(p["wh1"].T)
    # (5) fused tied projection: (y@Wh2^T + bh2)@E^T == y@(E@Wh2)^T + bh2@E^T
    wout_t = (p["emb_w"] @ p["wh2"]).T                                       # (H, V)
    bout = p["bh2"] @ p["emb_w"].T                                           # (1, V)
    # (6) all biases packed into a single (8, 128) slab
    bw = max(lh, N_VOCAB, D_HID)
    biases = jnp.zeros((8, bw), f32)
    biases = biases.at[0, :lh].set(p["bc1"][0])
    biases = biases.at[1, :lh].set(p["bc2"][0])
    biases = biases.at[2, :lh].set(bwave[0])
    biases = biases.at[3, :D_HID].set(p["bh1"][0])
    biases = biases.at[4, :N_VOCAB].set(bout[0])
    return {"tbl2": tbl2, "wc1_t": wc1_t, "wc2_t": wc2_t, "wave": wave,
            "wh1p": wh1p, "wout_t": wout_t, "biases": biases}


# ------------------------------ wrapper (glue) -------------------------------
def rnn_dec_forward(prep, enc_hid, tgt):
    b_real, seq = tgt.shape
    # pad batch to a multiple of 8 so every per-wave slab fills the 8 sublanes
    b_pad = max(8, ((b_real + 7) // 8) * 8)
    enc_p = jnp.zeros((b_pad, enc_hid.shape[1]), jnp.float32).at[:b_real].set(enc_hid)
    tgt_p = jnp.zeros((b_pad, seq), jnp.int32).at[:b_real].set(tgt.astype(jnp.int32))
    tgt_tm = tgt_p.T.reshape(seq * b_pad, 1)        # time-major: row = t*b_pad + b

    inputs = (tgt_tm, enc_p, prep["wc1_t"], prep["wc2_t"], prep["tbl2"],
              prep["wave"], prep["wh1p"], prep["wout_t"], prep["biases"])
    kernel = functools.partial(
        rnn_dec_kernel, batch=b_pad, batch_real=b_real, seq=seq,
        n_layer=N_LAYER, d_hid=D_HID, n_vocab=N_VOCAB)

    out = pl.pallas_call(
        kernel,
        out_shape=jax.ShapeDtypeStruct((seq * b_pad, N_VOCAB), jnp.float32),
        in_specs=[pl.BlockSpec(memory_space=pltpu.MemorySpace.VMEM)] * len(inputs),
        out_specs=pl.BlockSpec(memory_space=pltpu.MemorySpace.VMEM),
        scratch_shapes=[pltpu.VMEM((seq * b_pad, N_LAYER * D_HID), jnp.float32)],
    )(*inputs)
    # time-major (S*Bp, V) -> (B, S, V), dropping padded batch rows
    return out.reshape(seq, b_pad, N_VOCAB)[:, :b_real].transpose(1, 0, 2)


# --------------------------- pure-JAX reference ------------------------------
def reference_forward(p, enc_hid, tgt):
    emb_x = p["emb_w"][tgt]                                          # (B,S,E)
    x = jnp.maximum(emb_x @ p["we1"].T + p["be1"], 0.0)
    x = jnp.maximum(x @ p["we2"].T + p["be2"], 0.0)                  # (B,S,H)
    h0 = jnp.maximum(enc_hid @ p["wc1"].T + p["bc1"], 0.0)
    h0 = jnp.maximum(h0 @ p["wc2"].T + p["bc2"], 0.0)                # (B, L*H)
    h0 = h0.reshape(N_LAYER, -1, D_HID)                              # torch reshape
    layer_in = x
    for l in range(N_LAYER):
        h = h0[l]
        outs = []
        for t in range(layer_in.shape[1]):
            h = jnp.tanh(layer_in[:, t, :] @ p["wih"][l].T + p["bih"][l, 0]
                         + h @ p["whh"][l].T + p["bhh"][l, 0])
            outs.append(h)
        layer_in = jnp.stack(outs, axis=1)
    out = jnp.maximum(layer_in @ p["wh1"].T + p["bh1"], 0.0)
    out = out @ p["wh2"].T + p["bh2"]
    return out @ p["emb_w"].T


# ------------------------------- param init ----------------------------------
def init_params(key):
    ks = jax.random.split(key, 16)
    def w(k, shape, scale=0.1):
        return jax.random.normal(k, shape, jnp.float32) * scale
    emb_w = w(ks[0], (N_VOCAB, D_EMB)).at[0].set(0.0)   # padding_idx=0
    return {
        "emb_w": emb_w,
        # emb_to_hid
        "we1": w(ks[1], (D_HID, D_EMB)),  "be1": w(ks[2], (1, D_HID)),
        "we2": w(ks[3], (D_HID, D_HID)),  "be2": w(ks[4], (1, D_HID)),
        # enc_to_hid
        "wc1": w(ks[5], (D_HID * N_LAYER, H_ENC)),
        "bc1": w(ks[6], (1, D_HID * N_LAYER)),
        "wc2": w(ks[7], (D_HID * N_LAYER, D_HID * N_LAYER)),
        "bc2": w(ks[8], (1, D_HID * N_LAYER)),
        # RNN stacks
        "wih": w(ks[9], (N_LAYER, D_HID, D_HID)),
        "bih": w(ks[10], (N_LAYER, 1, D_HID)),
        "whh": w(ks[11], (N_LAYER, D_HID, D_HID)),
        "bhh": w(ks[12], (N_LAYER, 1, D_HID)),
        # hid_to_emb
        "wh1": w(ks[13], (D_HID, D_HID)), "bh1": w(ks[14], (1, D_HID)),
        "wh2": w(ks[15], (D_EMB, D_HID)),
        "bh2": jnp.zeros((1, D_EMB), jnp.float32),
    }


if __name__ == "__main__":
    key = jax.random.PRNGKey(0)
    k_p, k_e, k_t, k_e2, k_t2 = jax.random.split(key, 5)
    params = init_params(k_p)
    prep = prepare_params(params)                      # one-time, load-time fusion

    enc_hid = jax.random.normal(k_e, (B, H_ENC), jnp.float32)
    tgt = jax.random.randint(k_t, (B, S), 0, N_VOCAB, dtype=jnp.int32)

    logits = jax.block_until_ready(rnn_dec_forward(prep, enc_hid, tgt))
    ref = jax.block_until_ready(reference_forward(params, enc_hid, tgt))
    assert logits.shape == (B, S, N_VOCAB), logits.shape
    assert jnp.allclose(logits, ref, rtol=1e-3, atol=1e-3), (
        float(jnp.max(jnp.abs(logits - ref))))

    # extra check with batch != n_layer (exercises torch's reshape(L, -1, H) path
    # and the padded-batch handling)
    B2 = 3
    enc_hid2 = jax.random.normal(k_e2, (B2, H_ENC), jnp.float32)
    tgt2 = jax.random.randint(k_t2, (B2, S), 0, N_VOCAB, dtype=jnp.int32)
    logits2 = jax.block_until_ready(rnn_dec_forward(prep, enc_hid2, tgt2))
    ref2 = jax.block_until_ready(reference_forward(params, enc_hid2, tgt2))
    assert jnp.allclose(logits2, ref2, rtol=1e-3, atol=1e-3), (
        float(jnp.max(jnp.abs(logits2 - ref2))))

    print("KERNEL_OK")
</pallas_src>

<mosaic_0001>
module attributes {stable_mosaic.version = 11 : i64} {
  func.func @rnn_dec_kernel(%arg0: memref<64x1xi32, #tpu.memory_space<vmem>>, %arg1: memref<8x32xf32, #tpu.memory_space<vmem>>, %arg2: memref<32x64xf32, #tpu.memory_space<vmem>>, %arg3: memref<64x64xf32, #tpu.memory_space<vmem>>, %arg4: memref<128x64xf32, #tpu.memory_space<vmem>>, %arg5: memref<64x64xf32, #tpu.memory_space<vmem>>, %arg6: memref<64x32xf32, #tpu.memory_space<vmem>>, %arg7: memref<32x128xf32, #tpu.memory_space<vmem>>, %arg8: memref<8x128xf32, #tpu.memory_space<vmem>>, %arg9: memref<64x128xf32, #tpu.memory_space<vmem>>, %arg10: memref<64x64xf32, #tpu.memory_space<vmem>>) attributes {dimension_semantics = [], scalar_prefetch = 0 : i64, scratch_operands = 1 : i64, tpu.core_type = #tpu.core_type<tc>} {
    %c0 = arith.constant 0 : index
    %c0_0 = arith.constant 0 : index
    %0 = vector.load %arg8[%c0, %c0_0] : memref<8x128xf32, #tpu.memory_space<vmem>>, vector<8x128xf32>
    %1 = vector.extract_strided_slice %0 {offsets = [0, 0], sizes = [1, 64], strides = [1, 1]} : vector<8x128xf32> to vector<1x64xf32>
    %2 = vector.extract_strided_slice %0 {offsets = [1, 0], sizes = [1, 64], strides = [1, 1]} : vector<8x128xf32> to vector<1x64xf32>
    %3 = vector.extract_strided_slice %0 {offsets = [2, 0], sizes = [1, 64], strides = [1, 1]} : vector<8x128xf32> to vector<1x64xf32>
    %c0_1 = arith.constant 0 : index
    %c0_2 = arith.constant 0 : index
    %4 = vector.load %arg1[%c0_1, %c0_2] : memref<8x32xf32, #tpu.memory_space<vmem>>, vector<8x32xf32>
    %c0_3 = arith.constant 0 : index
    %c0_4 = arith.constant 0 : index
    %5 = vector.load %arg2[%c0_3, %c0_4] : memref<32x64xf32, #tpu.memory_space<vmem>>, vector<32x64xf32>
    %cst = arith.constant dense<0.000000e+00> : vector<8x64xf32>
    %6 = tpu.matmul %4, %5, %cst {dimension_numbers = #tpu.dot_dimension_numbers<[1], [0], [0], [1], [0, 0, 1, 1], [], []>} : vector<8x32xf32>, vector<32x64xf32>, vector<8x64xf32> -> vector<8x64xf32>
    %7 = vector.broadcast %1 : vector<1x64xf32> to vector<8x64xf32>
    %8 = arith.addf %6, %7 : vector<8x64xf32>
    %cst_5 = arith.constant 0.000000e+00 : f32
    %9 = vector.broadcast %cst_5 : f32 to vector<8x64xf32>
    %10 = arith.maximumf %8, %9 : vector<8x64xf32>
    %c0_6 = arith.constant 0 : index
    %c0_7 = arith.constant 0 : index
    %11 = vector.load %arg3[%c0_6, %c0_7] : memref<64x64xf32, #tpu.memory_space<vmem>>, vector<64x64xf32>
    %cst_8 = arith.constant dense<0.000000e+00> : vector<8x64xf32>
    %12 = tpu.matmul %10, %11, %cst_8 {dimension_numbers = #tpu.dot_dimension_numbers<[1], [0], [0], [1], [0, 0, 1, 1], [], []>} : vector<8x64xf32>, vector<64x64xf32>, vector<8x64xf32> -> vector<8x64xf32>
    %13 = vector.broadcast %2 : vector<1x64xf32> to vector<8x64xf32>
    %14 = arith.addf %12, %13 : vector<8x64xf32>
    %cst_9 = arith.constant 0.000000e+00 : f32
    %15 = vector.broadcast %cst_9 : f32 to vector<8x64xf32>
    %16 = arith.maximumf %14, %15 : vector<8x64xf32>
    %17 = vector.extract_strided_slice %16 {offsets = [0, 0], sizes = [1, 32], strides = [1, 1]} : vector<8x64xf32> to vector<1x32xf32>
    %18 = vector.extract_strided_slice %16 {offsets = [1, 0], sizes = [1, 32], strides = [1, 1]} : vector<8x64xf32> to vector<1x32xf32>
    %19 = tpu.concatenate %17, %18 in 1 : vector<1x32xf32>, vector<1x32xf32> -> vector<1x64xf32>
    %20 = vector.extract_strided_slice %16 {offsets = [0, 32], sizes = [1, 32], strides = [1, 1]} : vector<8x64xf32> to vector<1x32xf32>
    %21 = vector.extract_strided_slice %16 {offsets = [1, 32], sizes = [1, 32], strides = [1, 1]} : vector<8x64xf32> to vector<1x32xf32>
    %22 = tpu.concatenate %20, %21 in 1 : vector<1x32xf32>, vector<1x32xf32> -> vector<1x64xf32>
    %cst_10 = arith.constant 0.000000e+00 : f32
    %23 = vector.broadcast %cst_10 : f32 to vector<6x64xf32>
    %24 = tpu.concatenate %19, %22, %23 in 0 : vector<1x64xf32>, vector<1x64xf32>, vector<6x64xf32> -> vector<8x64xf32>
    %25 = tpu.iota {dimensions = array<i32: 1>} : vector<64x128xi32>
    %c0_11 = arith.constant 0 : index
    %c0_12 = arith.constant 0 : index
    %26 = vector.load %arg0[%c0_11, %c0_12] : memref<64x1xi32, #tpu.memory_space<vmem>>, vector<64x1xi32>
    %27 = vector.broadcast %26 : vector<64x1xi32> to vector<64x128xi32>
    %28 = arith.cmpi eq, %25, %27 : vector<64x128xi32>
    %29 = arith.extui %28 : vector<64x128xi1> to vector<64x128xi32>
    %30 = arith.sitofp %29 : vector<64x128xi32> to vector<64x128xf32>
    %c0_13 = arith.constant 0 : index
    %c0_14 = arith.constant 0 : index
    %31 = vector.load %arg4[%c0_13, %c0_14] : memref<128x64xf32, #tpu.memory_space<vmem>>, vector<128x64xf32>
    %cst_15 = arith.constant dense<0.000000e+00> : vector<64x64xf32>
    %32 = tpu.matmul %30, %31, %cst_15 {dimension_numbers = #tpu.dot_dimension_numbers<[1], [0], [0], [1], [0, 0, 1, 1], [], []>} : vector<64x128xf32>, vector<128x64xf32>, vector<64x64xf32> -> vector<64x64xf32>
    %33 = vector.broadcast %3 : vector<1x64xf32> to vector<64x64xf32>
    %34 = arith.addf %32, %33 : vector<64x64xf32>
    %c0_16 = arith.constant 0 : index
    %c0_17 = arith.constant 0 : index
    %35 = vector.load %arg10[%c0_16, %c0_17] : memref<64x64xf32, #tpu.memory_space<vmem>>, vector<64x64xf32>
    tpu.vector_store %arg10[%c0_16, %c0_17], %34 {strides = array<i32>} : memref<64x64xf32, #tpu.memory_space<vmem>>, vector<64x64xf32>,
    %c0_18 = arith.constant 0 : index
    %c0_19 = arith.constant 0 : index
    %36 = vector.load %arg5[%c0_18, %c0_19] : memref<64x64xf32, #tpu.memory_space<vmem>>, vector<64x64xf32>
    %c0_20 = arith.constant 0 : index
    %c0_21 = arith.constant 0 : index
    %37 = vector.load %arg6[%c0_20, %c0_21] : memref<64x32xf32, #tpu.memory_space<vmem>>, vector<64x32xf32>
    %c0_22 = arith.constant 0 : index
    %c0_23 = arith.constant 0 : index
    %38 = vector.load %arg7[%c0_22, %c0_23] : memref<32x128xf32, #tpu.memory_space<vmem>>, vector<32x128xf32>
    %39 = vector.shape_cast %3 : vector<1x64xf32> to vector<1x64xf32>
    %40 = vector.broadcast %39 : vector<1x64xf32> to vector<8x64xf32>
    %41 = vector.extract_strided_slice %0 {offsets = [3, 0], sizes = [1, 32], strides = [1, 1]} : vector<8x128xf32> to vector<1x32xf32>
    %42 = vector.shape_cast %41 : vector<1x32xf32> to vector<1x32xf32>
    %43 = vector.broadcast %42 : vector<1x32xf32> to vector<8x32xf32>
    %44 = vector.extract_strided_slice %0 {offsets = [4, 0], sizes = [1, 128], strides = [1, 1]} : vector<8x128xf32> to vector<1x128xf32>
    %45 = vector.shape_cast %44 : vector<1x128xf32> to vector<1x128xf32>
    %46 = vector.broadcast %45 : vector<1x128xf32> to vector<8x128xf32>
    %47 = tpu.iota {dimensions = array<i32: 1>} : vector<8x64xi32>
    %cst_24 = arith.constant dense<0.000000e+00> : vector<8x64xf32>
    %48 = tpu.matmul %24, %36, %cst_24 {dimension_numbers = #tpu.dot_dimension_numbers<[1], [0], [0], [1], [0, 0, 1, 1], [], []>} : vector<8x64xf32>, vector<64x64xf32>, vector<8x64xf32> -> vector<8x64xf32>
    %c0_25 = arith.constant 0 : index
    %c0_26 = arith.constant 0 : index
    %49 = vector.load %arg10[%c0_25, %c0_26] : memref<64x64xf32, #tpu.memory_space<vmem>>, vector<8x64xf32>
    %50 = arith.addf %48, %49 : vector<8x64xf32>
    %51 = math.tanh %50 : vector<8x64xf32>
    %c32_i32 = arith.constant 32 : i32
    %52 = vector.broadcast %c32_i32 : i32 to vector<8x64xi32>
    %53 = arith.cmpi slt, %47, %52 : vector<8x64xi32>
    %54 = arith.select %53, %51, %24 : vector<8x64xi1>, vector<8x64xf32>
    %cst_27 = arith.constant dense<0.000000e+00> : vector<8x64xf32>
    %55 = tpu.matmul %54, %36, %cst_27 {dimension_numbers = #tpu.dot_dimension_numbers<[1], [0], [0], [1], [0, 0, 1, 1], [], []>} : vector<8x64xf32>, vector<64x64xf32>, vector<8x64xf32> -> vector<8x64xf32>
    %c8 = arith.constant 8 : index
    %c0_28 = arith.constant 0 : index
    %56 = vector.load %arg10[%c8, %c0_28] : memref<64x64xf32, #tpu.memory_space<vmem>>, vector<8x64xf32>
    %57 = arith.addf %55, %56 : vector<8x64xf32>
    %58 = math.tanh %57 : vector<8x64xf32>
    %cst_29 = arith.constant dense<0.000000e+00> : vector<8x32xf32>
    %59 = tpu.matmul %58, %37, %cst_29 {dimension_numbers = #tpu.dot_dimension_numbers<[1], [0], [0], [1], [0, 0, 1, 1], [], []>} : vector<8x64xf32>, vector<64x32xf32>, vector<8x32xf32> -> vector<8x32xf32>
    %60 = arith.addf %59, %43 : vector<8x32xf32>
    %cst_30 = arith.constant 0.000000e+00 : f32
    %61 = vector.broadcast %cst_30 : f32 to vector<8x32xf32>
    %62 = arith.maximumf %60, %61 : vector<8x32xf32>
    %cst_31 = arith.constant dense<0.000000e+00> : vector<8x128xf32>
    %63 = tpu.matmul %62, %38, %cst_31 {dimension_numbers = #tpu.dot_dimension_numbers<[1], [0], [0], [1], [0, 0, 1, 1], [], []>} : vector<8x32xf32>, vector<32x128xf32>, vector<8x128xf32> -> vector<8x128xf32>
    %64 = arith.addf %63, %46 : vector<8x128xf32>
    %c0_32 = arith.constant 0 : index
    %c0_33 = arith.constant 0 : index
    %65 = vector.load %arg9[%c0_32, %c0_33] : memref<64x128xf32, #tpu.memory_space<vmem>>, vector<8x128xf32>
    tpu.vector_store %arg9[%c0_32, %c0_33], %64 {strides = array<i32>} : memref<64x128xf32, #tpu.memory_space<vmem>>, vector<8x128xf32>,
    %cst_34 = arith.constant dense<0.000000e+00> : vector<8x64xf32>
    %66 = tpu.matmul %58, %36, %cst_34 {dimension_numbers = #tpu.dot_dimension_numbers<[1], [0], [0], [1], [0, 0, 1, 1], [], []>} : vector<8x64xf32>, vector<64x64xf32>, vector<8x64xf32> -> vector<8x64xf32>
    %c16 = arith.constant 16 : index
    %c0_35 = arith.constant 0 : index
    %67 = vector.load %arg10[%c16, %c0_35] : memref<64x64xf32, #tpu.memory_space<vmem>>, vector<8x64xf32>
    %68 = arith.addf %66, %67 : vector<8x64xf32>
    %69 = math.tanh %68 : vector<8x64xf32>
    %cst_36 = arith.constant dense<0.000000e+00> : vector<8x32xf32>
    %70 = tpu.matmul %69, %37, %cst_36 {dimension_numbers = #tpu.dot_dimension_numbers<[1], [0], [0], [1], [0, 0, 1, 1], [], []>} : vector<8x64xf32>, vector<64x32xf32>, vector<8x32xf32> -> vector<8x32xf32>
    %71 = arith.addf %70, %43 : vector<8x32xf32>
    %cst_37 = arith.constant 0.000000e+00 : f32
    %72 = vector.broadcast %cst_37 : f32 to vector<8x32xf32>
    %73 = arith.maximumf %71, %72 : vector<8x32xf32>
    %cst_38 = arith.constant dense<0.000000e+00> : vector<8x128xf32>
    %74 = tpu.matmul %73, %38, %cst_38 {dimension_numbers = #tpu.dot_dimension_numbers<[1], [0], [0], [1], [0, 0, 1, 1], [], []>} : vector<8x32xf32>, vector<32x128xf32>, vector<8x128xf32> -> vector<8x128xf32>
    %75 = arith.addf %74, %46 : vector<8x128xf32>
    %c8_39 = arith.constant 8 : index
    %c0_40 = arith.constant 0 : index
    %76 = vector.load %arg9[%c8_39, %c0_40] : memref<64x128xf32, #tpu.memory_space<vmem>>, vector<8x128xf32>
    tpu.vector_store %arg9[%c8_39, %c0_40], %75 {strides = array<i32>} : memref<64x128xf32, #tpu.memory_space<vmem>>, vector<8x128xf32>,
    %cst_41 = arith.constant dense<0.000000e+00> : vector<8x64xf32>
    %77 = tpu.matmul %69, %36, %cst_41 {dimension_numbers = #tpu.dot_dimension_numbers<[1], [0], [0], [1], [0, 0, 1, 1], [], []>} : vector<8x64xf32>, vector<64x64xf32>, vector<8x64xf32> -> vector<8x64xf32>
    %c24 = arith.constant 24 : index
    %c0_42 = arith.constant 0 : index
    %78 = vector.load %arg10[%c24, %c0_42] : memref<64x64xf32, #tpu.memory_space<vmem>>, vector<8x64xf32>
    %79 = arith.addf %77, %78 : vector<8x64xf32>
    %80 = math.tanh %79 : vector<8x64xf32>
    %cst_43 = arith.constant dense<0.000000e+00> : vector<8x32xf32>
    %81 = tpu.matmul %80, %37, %cst_43 {dimension_numbers = #tpu.dot_dimension_numbers<[1], [0], [0], [1], [0, 0, 1, 1], [], []>} : vector<8x64xf32>, vector<64x32xf32>, vector<8x32xf32> -> vector<8x32xf32>
    %82 = arith.addf %81, %43 : vector<8x32xf32>
    %cst_44 = arith.constant 0.000000e+00 : f32
    %83 = vector.broadcast %cst_44 : f32 to vector<8x32xf32>
    %84 = arith.maximumf %82, %83 : vector<8x32xf32>
    %cst_45 = arith.constant dense<0.000000e+00> : vector<8x128xf32>
    %85 = tpu.matmul %84, %38, %cst_45 {dimension_numbers = #tpu.dot_dimension_numbers<[1], [0], [0], [1], [0, 0, 1, 1], [], []>} : vector<8x32xf32>, vector<32x128xf32>, vector<8x128xf32> -> vector<8x128xf32>
    %86 = arith.addf %85, %46 : vector<8x128xf32>
    %c16_46 = arith.constant 16 : index
    %c0_47 = arith.constant 0 : index
    %87 = vector.load %arg9[%c16_46, %c0_47] : memref<64x128xf32, #tpu.memory_space<vmem>>, vector<8x128xf32>
    tpu.vector_store %arg9[%c16_46, %c0_47], %86 {strides = array<i32>} : memref<64x128xf32, #tpu.memory_space<vmem>>, vector<8x128xf32>,
    %cst_48 = arith.constant dense<0.000000e+00> : vector<8x64xf32>
    %88 = tpu.matmul %80, %36, %cst_48 {dimension_numbers = #tpu.dot_dimension_numbers<[1], [0], [0], [1], [0, 0, 1, 1], [], []>} : vector<8x64xf32>, vector<64x64xf32>, vector<8x64xf32> -> vector<8x64xf32>
    %c32 = arith.constant 32 : index
    %c0_49 = arith.constant 0 : index
    %89 = vector.load %arg10[%c32, %c0_49] : memref<64x64xf32, #tpu.memory_space<vmem>>, vector<8x64xf32>
    %90 = arith.addf %88, %89 : vector<8x64xf32>
    %91 = math.tanh %90 : vector<8x64xf32>
    %cst_50 = arith.constant dense<0.000000e+00> : vector<8x32xf32>
    %92 = tpu.matmul %91, %37, %cst_50 {dimension_numbers = #tpu.dot_dimension_numbers<[1], [0], [0], [1], [0, 0, 1, 1], [], []>} : vector<8x64xf32>, vector<64x32xf32>, vector<8x32xf32> -> vector<8x32xf32>
    %93 = arith.addf %92, %43 : vector<8x32xf32>
    %cst_51 = arith.constant 0.000000e+00 : f32
    %94 = vector.broadcast %cst_51 : f32 to vector<8x32xf32>
    %95 = arith.maximumf %93, %94 : vector<8x32xf32>
    %cst_52 = arith.constant dense<0.000000e+00> : vector<8x128xf32>
    %96 = tpu.matmul %95, %38, %cst_52 {dimension_numbers = #tpu.dot_dimension_numbers<[1], [0], [0], [1], [0, 0, 1, 1], [], []>} : vector<8x32xf32>, vector<32x128xf32>, vector<8x128xf32> -> vector<8x128xf32>
    %97 = arith.addf %96, %46 : vector<8x128xf32>
    %c24_53 = arith.constant 24 : index
    %c0_54 = arith.constant 0 : index
    %98 = vector.load %arg9[%c24_53, %c0_54] : memref<64x128xf32, #tpu.memory_space<vmem>>, vector<8x128xf32>
    tpu.vector_store %arg9[%c24_53, %c0_54], %97 {strides = array<i32>} : memref<64x128xf32, #tpu.memory_space<vmem>>, vector<8x128xf32>,
    %cst_55 = arith.constant dense<0.000000e+00> : vector<8x64xf32>
    %99 = tpu.matmul %91, %36, %cst_55 {dimension_numbers = #tpu.dot_dimension_numbers<[1], [0], [0], [1], [0, 0, 1, 1], [], []>} : vector<8x64xf32>, vector<64x64xf32>, vector<8x64xf32> -> vector<8x64xf32>
    %c40 = arith.constant 40 : index
    %c0_56 = arith.constant 0 : index
    %100 = vector.load %arg10[%c40, %c0_56] : memref<64x64xf32, #tpu.memory_space<vmem>>, vector<8x64xf32>
    %101 = arith.addf %99, %100 : vector<8x64xf32>
    %102 = math.tanh %101 : vector<8x64xf32>
    %cst_57 = arith.constant dense<0.000000e+00> : vector<8x32xf32>
    %103 = tpu.matmul %102, %37, %cst_57 {dimension_numbers = #tpu.dot_dimension_numbers<[1], [0], [0], [1], [0, 0, 1, 1], [], []>} : vector<8x64xf32>, vector<64x32xf32>, vector<8x32xf32> -> vector<8x32xf32>
    %104 = arith.addf %103, %43 : vector<8x32xf32>
    %cst_58 = arith.constant 0.000000e+00 : f32
    %105 = vector.broadcast %cst_58 : f32 to vector<8x32xf32>
    %106 = arith.maximumf %104, %105 : vector<8x32xf32>
    %cst_59 = arith.constant dense<0.000000e+00> : vector<8x128xf32>
    %107 = tpu.matmul %106, %38, %cst_59 {dimension_numbers = #tpu.dot_dimension_numbers<[1], [0], [0], [1], [0, 0, 1, 1], [], []>} : vector<8x32xf32>, vector<32x128xf32>, vector<8x128xf32> -> vector<8x128xf32>
    %108 = arith.addf %107, %46 : vector<8x128xf32>
    %c32_60 = arith.constant 32 : index
    %c0_61 = arith.constant 0 : index
    %109 = vector.load %arg9[%c32_60, %c0_61] : memref<64x128xf32, #tpu.memory_space<vmem>>, vector<8x128xf32>
    tpu.vector_store %arg9[%c32_60, %c0_61], %108 {strides = array<i32>} : memref<64x128xf32, #tpu.memory_space<vmem>>, vector<8x128xf32>,
    %cst_62 = arith.constant dense<0.000000e+00> : vector<8x64xf32>
    %110 = tpu.matmul %102, %36, %cst_62 {dimension_numbers = #tpu.dot_dimension_numbers<[1], [0], [0], [1], [0, 0, 1, 1], [], []>} : vector<8x64xf32>, vector<64x64xf32>, vector<8x64xf32> -> vector<8x64xf32>
    %c48 = arith.constant 48 : index
    %c0_63 = arith.constant 0 : index
    %111 = vector.load %arg10[%c48, %c0_63] : memref<64x64xf32, #tpu.memory_space<vmem>>, vector<8x64xf32>
    %112 = arith.addf %110, %111 : vector<8x64xf32>
    %113 = math.tanh %112 : vector<8x64xf32>
    %cst_64 = arith.constant dense<0.000000e+00> : vector<8x32xf32>
    %114 = tpu.matmul %113, %37, %cst_64 {dimension_numbers = #tpu.dot_dimension_numbers<[1], [0], [0], [1], [0, 0, 1, 1], [], []>} : vector<8x64xf32>, vector<64x32xf32>, vector<8x32xf32> -> vector<8x32xf32>
    %115 = arith.addf %114, %43 : vector<8x32xf32>
    %cst_65 = arith.constant 0.000000e+00 : f32
    %116 = vector.broadcast %cst_65 : f32 to vector<8x32xf32>
    %117 = arith.maximumf %115, %116 : vector<8x32xf32>
    %cst_66 = arith.constant dense<0.000000e+00> : vector<8x128xf32>
    %118 = tpu.matmul %117, %38, %cst_66 {dimension_numbers = #tpu.dot_dimension_numbers<[1], [0], [0], [1], [0, 0, 1, 1], [], []>} : vector<8x32xf32>, vector<32x128xf32>, vector<8x128xf32> -> vector<8x128xf32>
    %119 = arith.addf %118, %46 : vector<8x128xf32>
    %c40_67 = arith.constant 40 : index
    %c0_68 = arith.constant 0 : index
    %120 = vector.load %arg9[%c40_67, %c0_68] : memref<64x128xf32, #tpu.memory_space<vmem>>, vector<8x128xf32>
    tpu.vector_store %arg9[%c40_67, %c0_68], %119 {strides = array<i32>} : memref<64x128xf32, #tpu.memory_space<vmem>>, vector<8x128xf32>,
    %cst_69 = arith.constant dense<0.000000e+00> : vector<8x64xf32>
    %121 = tpu.matmul %113, %36, %cst_69 {dimension_numbers = #tpu.dot_dimension_numbers<[1], [0], [0], [1], [0, 0, 1, 1], [], []>} : vector<8x64xf32>, vector<64x64xf32>, vector<8x64xf32> -> vector<8x64xf32>
    %c56 = arith.constant 56 : index
    %c0_70 = arith.constant 0 : index
    %122 = vector.load %arg10[%c56, %c0_70] : memref<64x64xf32, #tpu.memory_space<vmem>>, vector<8x64xf32>
    %123 = arith.addf %121, %122 : vector<8x64xf32>
    %124 = math.tanh %123 : vector<8x64xf32>
    %cst_71 = arith.constant dense<0.000000e+00> : vector<8x32xf32>
    %125 = tpu.matmul %124, %37, %cst_71 {dimension_numbers = #tpu.dot_dimension_numbers<[1], [0], [0], [1], [0, 0, 1, 1], [], []>} : vector<8x64xf32>, vector<64x32xf32>, vector<8x32xf32> -> vector<8x32xf32>
    %126 = arith.addf %125, %43 : vector<8x32xf32>
    %cst_72 = arith.constant 0.000000e+00 : f32
    %127 = vector.broadcast %cst_72 : f32 to vector<8x32xf32>
    %128 = arith.maximumf %126, %127 : vector<8x32xf32>
    %cst_73 = arith.constant dense<0.000000e+00> : vector<8x128xf32>
    %129 = tpu.matmul %128, %38, %cst_73 {dimension_numbers = #tpu.dot_dimension_numbers<[1], [0], [0], [1], [0, 0, 1, 1], [], []>} : vector<8x32xf32>, vector<32x128xf32>, vector<8x128xf32> -> vector<8x128xf32>
    %130 = arith.addf %129, %46 : vector<8x128xf32>
    %c48_74 = arith.constant 48 : index
    %c0_75 = arith.constant 0 : index
    %131 = vector.load %arg9[%c48_74, %c0_75] : memref<64x128xf32, #tpu.memory_space<vmem>>, vector<8x128xf32>
    tpu.vector_store %arg9[%c48_74, %c0_75], %130 {strides = array<i32>} : memref<64x128xf32, #tpu.memory_space<vmem>>, vector<8x128xf32>,
    %cst_76 = arith.constant dense<0.000000e+00> : vector<8x64xf32>
    %132 = tpu.matmul %124, %36, %cst_76 {dimension_numbers = #tpu.dot_dimension_numbers<[1], [0], [0], [1], [0, 0, 1, 1], [], []>} : vector<8x64xf32>, vector<64x64xf32>, vector<8x64xf32> -> vector<8x64xf32>
    %133 = arith.addf %132, %40 : vector<8x64xf32>
    %134 = math.tanh %133 : vector<8x64xf32>
    %cst_77 = arith.constant dense<0.000000e+00> : vector<8x32xf32>
    %135 = tpu.matmul %134, %37, %cst_77 {dimension_numbers = #tpu.dot_dimension_numbers<[1], [0], [0], [1], [0, 0, 1, 1], [], []>} : vector<8x64xf32>, vector<64x32xf32>, vector<8x32xf32> -> vector<8x32xf32>
    %136 = arith.addf %135, %43 : vector<8x32xf32>
    %cst_78 = arith.constant 0.000000e+00 : f32
    %137 = vector.broadcast %cst_78 : f32 to vector<8x32xf32>
    %138 = arith.maximumf %136, %137 : vector<8x32xf32>
    %cst_79 = arith.constant dense<0.000000e+00> : vector<8x128xf32>
    %139 = tpu.matmul %138, %38, %cst_79 {dimension_numbers = #tpu.dot_dimension_numbers<[1], [0], [0], [1], [0, 0, 1, 1], [], []>} : vector<8x32xf32>, vector<32x128xf32>, vector<8x128xf32> -> vector<8x128xf32>
    %140 = arith.addf %139, %46 : vector<8x128xf32>
    %c56_80 = arith.constant 56 : index
    %c0_81 = arith.constant 0 : index
    %141 = vector.load %arg9[%c56_80, %c0_81] : memref<64x128xf32, #tpu.memory_space<vmem>>, vector<8x128xf32>
    tpu.vector_store %arg9[%c56_80, %c0_81], %140 {strides = array<i32>} : memref<64x128xf32, #tpu.memory_space<vmem>>, vector<8x128xf32>,
    return
  }
}

</mosaic_0001>

<bundles_post_ra>
// kernel: tpu_custom_call.1
= control target key start
LH: loop header
LB: loop body
LE: loop exit
PB: predicated region body
PF: predicated region fallthrough
CT: control target
= control target key end

     0   :  { %v3412_v3 = vmov 0.0|0.0   ;;  %vm3413_vm0 = vmmov 0   ;;  %v3414_v6 = vmov 0.0   ;;  %s4007_s0 = inlined_call_operand.vmem [shape: s32[64,1], index: 0, kind: input, shape index: {}]   ;;  %s4008_s1 = inlined_call_operand.vmem [shape: f32[8,32], index: 1, kind: input, shape index: {}]   ;;  %s4009_s2 = inlined_call_operand.vmem [shape: f32[32,64], index: 2, kind: input, shape index: {}]   ;;  %s4010_s3 = inlined_call_operand.vmem [shape: f32[64,64], index: 3, kind: input, shape index: {}]   ;;  %s4011_s4 = inlined_call_operand.vmem [shape: f32[128,64], index: 4, kind: input, shape index: {}]   ;;  %s4012_s5 = inlined_call_operand.vmem [shape: f32[64,64], index: 5, kind: input, shape index: {}]   ;;  %s4013_s6 = inlined_call_operand.vmem [shape: f32[64,32], index: 6, kind: input, shape index: {}]   ;;  %s4014_s7 = inlined_call_operand.vmem [shape: f32[32,128], index: 7, kind: input, shape index: {}]   ;;  %s4015_s8 = inlined_call_operand.vmem [shape: f32[8,128], index: 8, kind: input, shape index: {}]   ;;  %s4016_s9 = inlined_call_operand.hbm [shape: f32[64,128], index: 9, kind: output, shape index: {}]  }
   0x1   :  { %v35_v0 = vld [vmem:[%s4009_s2] sm:$0xff]  ;;  %v36_v1 = vld [vmem:[%s4009_s2 + $0x8] sm:$0xff]  ;;  %v37_v2 = vld [vmem:[%s4009_s2 + $0x10] sm:$0xff]  ;;  %3056 = vmatprep.subr.bf16.mxu0 %v3412_v3  ;;  %2579 = vmatprep.mubr.msk.f32.mxu0 %vm3413_vm0, %v3414_v6 }
   0x2   :  { %v3057_v4 = vpack.c.bf16 %v36_v1, %v35_v0  ;;  %v38_v5 = vld [vmem:[%s4009_s2 + $0x18] sm:$0xff]  ;;  %v118_v7 = vld [vmem:[%s4010_s3] sm:$0xff]  ;;  %3062 = vmatprep.subr.bf16.mxu1 %v3412_v3  ;;  %v119_v8 = vld [vmem:[%s4010_s3 + $0x8] sm:$0xff]  ;;  %2598 = vmatprep.mubr.msk.f32.mxu1 %vm3413_vm0, %v3414_v6 }
   0x3   :  { %v120_v9 = vld [vmem:[%s4010_s3 + $0x10] sm:$0xff]  ;;  %v121_v10 = vld [vmem:[%s4010_s3 + $0x18] sm:$0xff]  ;;  %v3060_v11 = vpack.c.bf16 %v38_v5, %v37_v2  ;;  %v3063_v12 = vpack.c.bf16 %v119_v8, %v118_v7 }
   0x4   :  { %3058 = vmatpush3.bf16.msra.mxu0 %v3057_v4 }
   0x5   :  { %3059 = vmatprep.subr.bf16.mxu0 %v3412_v3 }
   0x6   :  { %14 = vsyncpa [#allocation4], 0  ;;  %3064 = vmatpush3.bf16.msra.mxu1 %v3063_v12  ;;  %v3066_v13 = vpack.c.bf16 %v121_v10, %v120_v9  ;;  %v122_v14 = vld [vmem:[%s4010_s3 + $0x20] sm:$0xff]  ;;  %v123_v15 = vld [vmem:[%s4010_s3 + $0x28] sm:$0xff]  ;;  %vm43_vm1 = vcmask 261120   ;;  %v3415_v22 = vmov 0   ;;  %v39_v27 = vlaneseq }
   0x7   :  { %3065 = vmatprep.subr.bf16.mxu1 %v3412_v3  ;;  %v34_v16 = vld [vmem:[%s4008_s1] sm:$0xff]  ;;  %v3069_v17 = vpack.c.bf16 %v123_v15, %v122_v14  ;;  %v124_v18 = vld [vmem:[%s4010_s3 + $0x30] sm:$0xff]  ;;  %v125_v19 = vld [vmem:[%s4010_s3 + $0x38] sm:$0xff]  ;;  %3368 = vset.pattern.permute.xlu0 %v3415_v22  ;;  %vm130_vm2 = vcmask 523264   ;;  %v3416_v46 = vmov 1.0   ;;  %s3417_s20 = smov 96  }
   0x8   :  { %3061 = vmatpush3.bf16.msra.mxu0 %v3060_v11  ;;  %v3072_v20 = vpack.c.bf16 %v125_v19, %v124_v18  ;;  %v225_v21 = vld [vmem:[%s4007_s0] sm:$0xff]  ;;  %3369 = vset.pattern.permute.xlu1 %v3415_v22  ;;  %v226_v23 = vld [vmem:[%s4007_s0 + $0x8] sm:$0xff]  ;;  %v227_v24 = vld [vmem:[%s4007_s0 + $0x10] sm:$0xff]  ;;  %v3538_v28 = vshrl.u32 %v39_v27, 7  ;;  %v3550_v36 = vand.u32 127, %v39_v27  ;;  %s3418_s21 = smov 32  }
   0x9   :  { %234 = vperm.xlu0 %3368, %v225_v21   ;;  %v229_v25 = vld [vmem:[%s4007_s0 + $0x20] sm:$0xff]  ;;  %v231_v26 = vld [vmem:[%s4007_s0 + $0x30] sm:$0xff]  ;;  %v282_v38 = vld [vmem:[%s4011_s4 + $0x8] sm:$0xff]  ;;  %vm219_vm6 = vcmask 1040384   ;;  %vm221_vm7 = vcmask 1041408  }
   0xa   :  { %3067 = vmatpush3.bf16.msra.mxu1 %v3066_v13  ;;  %v41_v29 = vsub.s32 0, %v3538_v28  ;;  %v3544_v30 = vld [vmem:[%s4015_s8] sm:$0xff]  ;;  %v283_v39 = vld [vmem:[%s4011_s4 + $0x10] sm:$0xff]  ;;  %v284_v42 = vld [vmem:[%s4011_s4 + $0x18] sm:$0xff]  ;;  %v128_v12 = vsub.s32 1, %v3538_v28  ;;  %vm517_vm12 = vcmp.lt.s32.totalorder %v3550_v36, 32 }
   0xb   :  { %2580 = vmatmul.mubr.msk.f32.vlgmr.msra.gmra.mrb[0].mxu0 %vm43_vm1, %v34_v16  ;;  %3068 = vmatprep.subr.bf16.mxu1 %v3412_v3  ;;  %v281_v37 = vld [vmem:[%s4011_s4] sm:$0xff]  ;;  %v3078_v43 = vpack.c.bf16 %v284_v42, %v283_v39  ;;  %v286_v45 = vld [vmem:[%s4011_s4 + $0x28] sm:$0xff]  ;;  %v287_v48 = vld [vmem:[%s4011_s4 + $0x30] sm:$0xff] }
   0xc   :  { %v42_v31 = vrot.slane %v3544_v30, %v41_v29  ;;  %v3074_v41 = vpack.c.bf16 %v282_v38, %v281_v37  ;;  %v285_v44 = vld [vmem:[%s4011_s4 + $0x20] sm:$0xff]  ;;  %v415_v50 = vld [vmem:[%s4012_s5 + $0x8] sm:$0xff]  ;;  %v288_v51 = vld [vmem:[%s4011_s4 + $0x38] sm:$0xff]  ;;  %v129_v16 = vrot.slane %v3544_v30, %v128_v12 }
   0xd   :  { %237 = vperm.xlu0 %3368, %v226_v23   ;;  %v3082_v47 = vpack.c.bf16 %v286_v45, %v285_v44  ;;  %v414_v49 = vld [vmem:[%s4012_s5] sm:$0xff]  ;;  %v416_v53 = vld [vmem:[%s4012_s5 + $0x10] sm:$0xff]  ;;  %v417_v54 = vld [vmem:[%s4012_s5 + $0x18] sm:$0xff]  ;;  %v3086_v56 = vpack.c.bf16 %v288_v51, %v287_v48 }
   0xe   :  { %3070 = vmatpush3.bf16.msra.mxu1 %v3069_v17  ;;  %3075 = vmatprep.subr.bf16.mxu0 %v3074_v41  ;;  %v3584_v52 = vpack.c.bf16 %v415_v50, %v414_v49  ;;  %v3593_v55 = vpack.c.bf16 %v417_v54, %v416_v53  ;;  %v289_v57 = vld [vmem:[%s4011_s4 + $0x40] sm:$0xff]  ;;  %v290_v58 = vld [vmem:[%s4011_s4 + $0x48] sm:$0xff]  ;;  %v291_v60 = vld [vmem:[%s4011_s4 + $0x50] sm:$0xff] }
   0xf   :  { %3071 = vmatprep.subr.bf16.mxu1 %v3412_v3  ;;  %3077 = vmatpush3.bf16.msra.mxu0 %v3074_v41  ;;  %v3090_v59 = vpack.c.bf16 %v290_v58, %v289_v57  ;;  %v292_v61 = vld [vmem:[%s4011_s4 + $0x58] sm:$0xff]  ;;  %v293_v63 = vld [vmem:[%s4011_s4 + $0x60] sm:$0xff]  ;;  %v294_v0 = vld [vmem:[%s4011_s4 + $0x68] sm:$0xff] }
  0x10   :  { %3079 = vmatprep.subr.bf16.mxu0 %v3078_v43  ;;  %v3094_v62 = vpack.c.bf16 %v292_v61, %v291_v60  ;;  %v3098_v1 = vpack.c.bf16 %v294_v0, %v293_v63  ;;  %v295_v2 = vld [vmem:[%s4011_s4 + $0x70] sm:$0xff]  ;;  %v296_v4 = vld [vmem:[%s4011_s4 + $0x78] sm:$0xff]  ;;  %v418_v9 = vld [vmem:[%s4012_s5 + $0x20] sm:$0xff] }
  0x11   :  { %240 = vperm.xlu0 %3368, %v227_v24   ;;  %v3102_v5 = vpack.c.bf16 %v296_v4, %v295_v2  ;;  %v419_v10 = vld [vmem:[%s4012_s5 + $0x28] sm:$0xff]  ;;  %v420_v13 = vld [vmem:[%s4012_s5 + $0x30] sm:$0xff]  ;;  %v421_v14 = vld [vmem:[%s4012_s5 + $0x38] sm:$0xff] }
  0x12   :  { %3073 = vmatpush3.bf16.msra.mxu1 %v3072_v20  ;;  %v3633_v11 = vpack.c.bf16 %v419_v10, %v418_v9  ;;  %v3644_v15 = vpack.c.bf16 %v421_v14, %v420_v13  ;;  %v228_v22 = vld [vmem:[%s4007_s0 + $0x18] sm:$0xff]  ;;  %v230_v23 = vld [vmem:[%s4007_s0 + $0x28] sm:$0xff]  ;;  %v422_v45 = vld [vmem:[%s4013_s6] sm:$0xff] }
  0x13   :  { %3106 = vmatprep.subr.bf16.mxu1 %v3412_v3  ;;  %3081 = vmatpush3.bf16.msra.mxu0 %v3078_v43  ;;  %v232_v44 = vld [vmem:[%s4007_s0 + $0x38] sm:$0xff]  ;;  %v424_v58 = vld [vmem:[%s4013_s6 + $0x10] sm:$0xff]  ;;  %v430_v2 = vld [vmem:[%s4014_s7] sm:$0xff] }
  0x14   :  { %3083 = vmatprep.subr.bf16.mxu0 %v3082_v47  ;;  %v428_v61 = vld [vmem:[%s4013_s6 + $0x30] sm:$0xff]  ;;  %v429_v63 = vld [vmem:[%s4013_s6 + $0x38] sm:$0xff]  ;;  %v431_v4 = vld [vmem:[%s4014_s7 + $0x8] sm:$0xff] }
  0x15   :  { %246 = vperm.xlu0 %3368, %v229_v25   ;;  %v3730_v0 = vpack.c.bf16 %v429_v63, %v428_v61 }
  0x17   :  { %3085 = vmatpush3.bf16.msra.mxu0 %v3082_v47  ;;  %v423_v47 = vld [vmem:[%s4013_s6 + $0x8] sm:$0xff] }
  0x18   :  { %3087 = vmatprep.subr.bf16.mxu0 %v3086_v56  ;;  %v3693_v48 = vpack.c.bf16 %v423_v47, %v422_v45 }
  0x19   :  { %252 = vperm.xlu0 %3368, %v231_v26  }
  0x1b   :  { %3089 = vmatpush3.bf16.msra.mxu0 %v3086_v56 }
  0x1c   :  { %3091 = vmatprep.subr.bf16.mxu0 %v3090_v59 }
  0x1f   :  { %3093 = vmatpush3.bf16.msra.mxu0 %v3090_v59  ;;  %v425_v59 = vld [vmem:[%s4013_s6 + $0x18] sm:$0xff] }
  0x20   :  { %3095 = vmatprep.subr.bf16.mxu0 %v3094_v62  ;;  %v3711_v60 = vpack.c.bf16 %v425_v59, %v424_v58 }
  0x23   :  { %3097 = vmatpush3.bf16.msra.mxu0 %v3094_v62 }
  0x24   :  { %3099 = vmatprep.subr.bf16.mxu0 %v3098_v1 }
  0x27   :  { %3101 = vmatpush3.bf16.msra.mxu0 %v3098_v1 }
  0x28   :  { %3103 = vmatprep.subr.bf16.mxu0 %v3102_v5 }
  0x2b   :  { %3105 = vmatpush3.bf16.msra.mxu0 %v3102_v5 }
  0x2c   :  { %3130 = vmatprep.subr.bf16.mxu0 %v3412_v3 }
  0x88   :  { %v235_v40 = vpop.permute.xlu0 %234 }
  0x89   :  { %vm257_vm3 = vcmp.eq.s32.totalorder %v3550_v36, %v235_v40 }
  0x8a   :  { %2633 = vmatprep.mubr.msk.f32.mxu0 %vm257_vm3, %v3416_v46 }
  0x8c   :  { %v238_v7 = vpop.permute.xlu0 %237 }
  0x8d   :  { %vm258_vm4 = vcmp.eq.s32.totalorder %v3550_v36, %v238_v7 }
  0x8e   :  { %2634 = vmatmul.mubr.msk.f32.vlgmr.msra.gmra.mrb[2].mxu0 %vm258_vm4, %v3416_v46 }
  0x8f   :  { %3132 = vmatpush3.bf16.msra.mxu0 %v3693_v48 }
  0x90   :  { %v241_v8 = vpop.permute.xlu0 %240  ;;  %3133 = vmatprep.subr.bf16.mxu0 %v3412_v3 }
  0x91   :  { %vm259_vm5 = vcmp.eq.s32.totalorder %v3550_v36, %v241_v8  ;;  %v3742_v8 = vpack.c.bf16 %v431_v4, %v430_v2 }
  0x92   :  { %2636 = vmatprep.mubr.msk.f32.mxu0 %vm259_vm5, %v3416_v46 }
  0x93   :  { %3135 = vmatpush3.bf16.msra.mxu0 %v3711_v60 }
  0x94   :  { %v247_v39 = vpop.permute.xlu0 %246  ;;  %3136 = vmatprep.subr.bf16.mxu0 %v3412_v3 }
  0x95   :  { %vm261_vm9 = vcmp.eq.s32.totalorder %v3550_v36, %v247_v39 }
  0x98   :  { %v253_v42 = vpop.permute.xlu0 %252 }
  0x99   :  { %vm263_vm11 = vcmp.eq.s32.totalorder %v3550_v36, %v253_v42 }
  0xde   :  { %v113_v32 = vpop.f32.mrb[0].mxu0 }
  0xdf   :  { %v114_v33 = vadd.f32 %v113_v32, %v42_v31  ;;  %v2581_v34 = vpop.f32.mrb[1].mxu0 }
  0xe1   :  { %v117_v35 = vmax.f32 %v114_v33, 0.0  ;;  %v299_v33 = vsub.s32 2, %v3538_v28 }
  0xe3   :  { %2599 = vmatmul.mubr.msk.f32.vlgmr.msra.gmra.mrb[0].mxu1 %vm130_vm2, %v117_v35  ;;  %v3664_v34 = vrot.slane %v3544_v30, %v299_v33 }
  0xe4   :  { %2661 = vmatprep.mubr.msk.f32.mxu1 %vm3413_vm0, %v3414_v6  ;;  %3108 = vmatpush3.bf16.msra.mxu1 %v3584_v52 }
  0xe5   :  { %3109 = vmatprep.subr.bf16.mxu1 %v3412_v3 }
  0xe8   :  { %3111 = vmatpush3.bf16.msra.mxu1 %v3593_v55 }
  0xe9   :  { %3112 = vmatprep.subr.bf16.mxu1 %v3412_v3 }
  0xec   :  { %3114 = vmatpush3.bf16.msra.mxu1 %v3633_v11 }
  0xed   :  { %3115 = vmatprep.subr.bf16.mxu1 %v3412_v3 }
  0xf0   :  { %3117 = vmatpush3.bf16.msra.mxu1 %v3644_v15 }
  0xf1   :  { %3118 = vmatprep.subr.bf16.mxu1 %v3412_v3 }
 0x161   :  { %v2635_v35 = vpop.f32.mrb[2].mxu0 }
 0x162   :  { %v373_v37 = vadd.f32 %v2635_v35, %v3664_v34  ;;  %v367_v38 = vpop.f32.mrb[3].mxu0 }
 0x163   :  { %v368_v40 = vadd.f32 %v367_v38, %v3664_v34 }
 0x164   :  { %407 = vst.msk [vmem:[#allocation2 + $0x8] sm:$0xff] %vm130_vm2, %v373_v37 }
 0x165   :  { %406 = vst.msk [vmem:[#allocation2] sm:$0xff] %vm130_vm2, %v368_v40 }
 0x16c   :  { %v442_v49 = vld [vmem:[#allocation2] sm:$0xff] }
 0x1b6   :  { %v200_v17 = vpop.f32.mrb[0].mxu1 }
 0x1b7   :  { %v201_v18 = vadd.f32 %v200_v17, %v129_v16  ;;  %v2600_v19 = vpop.f32.mrb[1].mxu1  ;;  %v519_v16 = vld [vmem:[#allocation2 + $0x8] sm:$0xff] }
 0x1b9   :  { %v204_v20 = vmax.f32 %v201_v18, 0.0 }
 0x1bb   :  { %211 = vrot.lane.b32.xlu1 %v204_v20, %s3417_s20  ;;  %v206_v21 = vrot.slane %v204_v20, 1 }
 0x1bf   :  { %207 = vrot.lane.b32.xlu1 %v206_v21, %s3418_s21 }
 0x1c3   :  { %243 = vperm.xlu1 %3369, %v228_v22  }
 0x1c7   :  { %249 = vperm.xlu1 %3369, %v230_v23  }
 0x1cb   :  { %255 = vperm.xlu1 %3369, %v232_v44  }
 0x22d   :  { %v212_v24 = vpop.permute.xlu1 %211 }
 0x22e   :  { %v215_v25 = vsel %vm43_vm1, %v212_v24, %v206_v21 }
 0x22f   :  { %v217_v26 = vrot.slane %v215_v25, 7  ;;  %v432_v25 = vld [vmem:[%s4014_s7 + $0x10] sm:$0xff] }
 0x231   :  { %v208_v27 = vpop.permute.xlu1 %207 }
 0x232   :  { %v210_v29 = vsel %vm43_vm1, %v204_v20, %v208_v27 }
 0x233   :  { %v220_v31 = vsel %vm219_vm6, %v210_v29, %v217_v26  ;;  %v433_v26 = vld [vmem:[%s4014_s7 + $0x18] sm:$0xff]  ;;  %v436_v29 = vsub.s32 3, %v3538_v28  ;;  %s3419_s7 = smov [#allocation3]  }
 0x234   :  { %v222_v32 = vsel %vm221_vm7, %v220_v31, 0.0  ;;  %v3779_v27 = vpack.c.bf16 %v433_v26, %v432_v25  ;;  %s2286_s2 = sshll.u32 %s3419_s7, 4  ;;  %s2287_s2 = int_to_ptr.vmem [resolvable:$true] %s2286_s2 }
 0x235   :  { %2662 = vmatmul.mubr.msk.f32.vlgmr.msra.gmra.mrb[2].mxu1 %vm130_vm2, %v222_v32  ;;  %v3787_v31 = vrot.slane %v3544_v30, %v436_v29  ;;  %s3388_s5 = scalar_lea.vmem %s2287_s2, 1024  ;;  %p3393_p1 = scmp.lt.s32.totalorder %s2287_s2, %s2287_s2 }
 0x236   :  { %3120 = vmatpush3.bf16.msra.mxu1 %v3584_v52  ;;  %2680 = vmatprep.mubr.msk.f32.mxu1 %vm3413_vm0, %v3414_v6  ;;  %p3389_p0 = scmp.ne.s32.totalorder %s2287_s2, %s3388_s5  ;;  %p3394_p2 = scmp.lt.s32.totalorder %s3388_s5, %s3388_s5 }
 0x237   :  { %3121 = vmatprep.subr.bf16.mxu1 %v3412_v3 }
 0x238   :  { %p3395_p3 = por %p3394_p2, %p3393_p1 }
 0x23a   :  { %3123 = vmatpush3.bf16.msra.mxu1 %v3593_v55  ;;  %p3396_p4 = pnand %p3395_p3, %p3389_p0 }
 0x23b   :  { %3124 = vmatprep.subr.bf16.mxu1 %v3412_v3 }
 0x23e   :  { %3126 = vmatpush3.bf16.msra.mxu1 %v3633_v11 }
 0x23f   :  { %3127 = vmatprep.subr.bf16.mxu1 %v3412_v3 }
 0x242   :  { %v244_v41 = vpop.permute.xlu1 %243  ;;  %3129 = vmatpush3.bf16.msra.mxu1 %v3644_v15 }
 0x243   :  { %vm260_vm8 = vcmp.eq.s32.totalorder %v3550_v36, %v244_v41  ;;  %3142 = vmatprep.subr.bf16.mxu1 %v3412_v3 }
 0x244   :  { %2637 = vmatmul.mubr.msk.f32.gmra.mrb[4].mxu0 %vm260_vm8, %v3416_v46 }
 0x245   :  { %2639 = vmatprep.mubr.msk.f32.mxu0 %vm261_vm9, %v3416_v46 }
 0x246   :  { %v250_v43 = vpop.permute.xlu1 %249 }
 0x247   :  { %vm262_vm10 = vcmp.eq.s32.totalorder %v3550_v36, %v250_v43  ;;  %v440_v43 = vsub.s32 4, %v3538_v28 }
 0x248   :  { %2640 = vmatmul.mubr.msk.f32.gmra.mrb[6].mxu0 %vm262_vm10, %v3416_v46 }
 0x249   :  { %2642 = vmatprep.mubr.msk.f32.mxu0 %vm263_vm11, %v3416_v46  ;;  %v3821_v44 = vrot.slane %v3544_v30, %v440_v43 }
 0x24a   :  { %v256_v57 = vpop.permute.xlu1 %255 }
 0x24b   :  { %vm264_vm13 = vcmp.eq.s32.totalorder %v3550_v36, %v256_v57  ;;  %v426_v36 = vld [vmem:[%s4013_s6 + $0x20] sm:$0xff] }
 0x24c   :  { %2643 = vmatmul.mubr.msk.f32.gmra.mrb[8].mxu0 %vm264_vm13, %v3416_v46  ;;  %v427_v46 = vld [vmem:[%s4013_s6 + $0x28] sm:$0xff] }
 0x24d   :  { %2699 = vmatprep.mubr.msk.f32.mxu0 %vm3413_vm0, %v3414_v6  ;;  %v3724_v62 = vpack.c.bf16 %v427_v46, %v426_v36 }
 0x24f   :  { %3138 = vmatpush3.bf16.msra.mxu0 %v3724_v62 }
 0x250   :  { %3139 = vmatprep.subr.bf16.mxu0 %v3412_v3 }
 0x253   :  { %3141 = vmatpush3.bf16.msra.mxu0 %v3730_v0 }
 0x254   :  { %3148 = vmatprep.subr.bf16.mxu0 %v3412_v3 }
 0x308   :  { %v512_v50 = vpop.f32.mrb[2].mxu1 }
 0x309   :  { %v513_v51 = vadd.f32 %v512_v50, %v442_v49  ;;  %v2663_v53 = vpop.f32.mrb[3].mxu1 }
 0x30b   :  { %3370 = vtanh.f32 %v513_v51 }
 0x315   :  { %v3371_v54 = vpop.eup %3370 }
 0x316   :  { %v518_v56 = vsel %vm517_vm12, %v3371_v54, %v222_v32 }
 0x317   :  { %2681 = vmatmul.mubr.msk.f32.vlgmr.msra.gmra.mrb[4].mxu1 %vm130_vm2, %v518_v56  ;;  %v2638_v1 = vpop.f32.mrb[4].mxu0 }
 0x318   :  { %2710 = vmatprep.mubr.msk.f32.mxu1 %vm3413_vm0, %v3414_v6  ;;  %v383_v5 = vadd.f32 %v2638_v1, %v3664_v34  ;;  %v377_v7 = vpop.f32.mrb[5].mxu0  ;;  %3144 = vmatpush3.bf16.msra.mxu1 %v3742_v8 }
 0x319   :  { %v378_v9 = vadd.f32 %v377_v7, %v3664_v34  ;;  %3145 = vmatprep.subr.bf16.mxu1 %v3412_v3 }
 0x31a   :  { %409 = vst.msk [vmem:[#allocation2 + $0x18] sm:$0xff] %vm130_vm2, %v383_v5 }
 0x31b   :  { %v2641_v10 = vpop.f32.mrb[6].mxu0  ;;  %408 = vst.msk [vmem:[#allocation2 + $0x10] sm:$0xff] %vm130_vm2, %v378_v9 }
 0x31c   :  { %v393_v12 = vadd.f32 %v2641_v10, %v3664_v34  ;;  %v387_v13 = vpop.f32.mrb[7].mxu0  ;;  %3147 = vmatpush3.bf16.msra.mxu1 %v3779_v27 }
 0x31d   :  { %v388_v14 = vadd.f32 %v387_v13, %v3664_v34  ;;  %3160 = vmatprep.subr.bf16.mxu1 %v3412_v3 }
 0x31e   :  { %411 = vst.msk [vmem:[#allocation2 + $0x28] sm:$0xff] %vm130_vm2, %v393_v12 }
 0x31f   :  { %410 = vst.msk [vmem:[#allocation2 + $0x20] sm:$0xff] %vm130_vm2, %v388_v14  ;;  %v2644_v20 = vpop.f32.mrb[8].mxu0 }
 0x320   :  { %v403_v21 = vadd.f32 %v2644_v20, %v3664_v34  ;;  %v397_v22 = vpop.f32.mrb[9].mxu0 }
 0x321   :  { %v398_v23 = vadd.f32 %v397_v22, %v3664_v34  ;;  %v962_v28 = vld [vmem:[#allocation2 + $0x18] sm:$0xff] }
 0x322   :  { %413 = vst.msk [vmem:[#allocation2 + $0x38] sm:$0xff] %vm130_vm2, %v403_v21  ;;  %v742_v38 = vld [vmem:[#allocation2 + $0x10] sm:$0xff] }
 0x323   :  { %412 = vst.msk [vmem:[#allocation2 + $0x30] sm:$0xff] %vm130_vm2, %v398_v23 }
 0x325   :  { %v1402_v20 = vld [vmem:[#allocation2 + $0x28] sm:$0xff] }
 0x326   :  { %v1182_v4 = vld [vmem:[#allocation2 + $0x20] sm:$0xff] }
 0x3ea   :  { %v589_v17 = vpop.f32.mrb[4].mxu1 }
 0x3eb   :  { %v590_v18 = vadd.f32 %v589_v17, %v519_v16  ;;  %v2682_v19 = vpop.f32.mrb[5].mxu1 }
 0x3ed   :  { %3372 = vtanh.f32 %v590_v18 }
 0x3f7   :  { %v3373_v24 = vpop.eup %3372 }
 0x3f8   :  { %2700 = vmatmul.mubr.msk.f32.vlgmr.msra.gmra.mrb[10].mxu0 %vm130_vm2, %v3373_v24 }
 0x3f9   :  { %3150 = vmatpush3.bf16.msra.mxu0 %v3584_v52  ;;  %2729 = vmatprep.mubr.msk.f32.mxu0 %vm3413_vm0, %v3414_v6 }
 0x3fa   :  { %3151 = vmatprep.subr.bf16.mxu0 %v3412_v3 }
 0x3fd   :  { %3153 = vmatpush3.bf16.msra.mxu0 %v3593_v55 }
 0x3fe   :  { %3154 = vmatprep.subr.bf16.mxu0 %v3412_v3 }
 0x401   :  { %3156 = vmatpush3.bf16.msra.mxu0 %v3633_v11 }
 0x402   :  { %3157 = vmatprep.subr.bf16.mxu0 %v3412_v3 }
 0x405   :  { %3159 = vmatpush3.bf16.msra.mxu0 %v3644_v15 }
 0x406   :  { %3172 = vmatprep.subr.bf16.mxu0 %v3412_v3 }
 0x408   :  { %2730 = vmatmul.mubr.msk.f32.vlgmr.msra.gmra.mrb[12].mxu0 %vm130_vm2, %v3373_v24 }
 0x409   :  { %3174 = vmatpush3.bf16.msra.mxu0 %v3742_v8  ;;  %2759 = vmatprep.mubr.msk.f32.mxu0 %vm3413_vm0, %v3414_v6 }
 0x40a   :  { %3175 = vmatprep.subr.bf16.mxu0 %v3412_v3 }
 0x40d   :  { %3177 = vmatpush3.bf16.msra.mxu0 %v3779_v27 }
 0x40e   :  { %3190 = vmatprep.subr.bf16.mxu0 %v3412_v3 }
 0x4cb   :  { %v663_v32 = vpop.f32.mrb[10].mxu0 }
 0x4cc   :  { %v664_v33 = vadd.f32 %v663_v32, %v3787_v31  ;;  %v2701_v35 = vpop.f32.mrb[11].mxu0 }
 0x4ce   :  { %v667_v37 = vmax.f32 %v664_v33, 0.0 }
 0x4d0   :  { %2711 = vmatmul.mubr.msk.f32.vlgmr.msra.gmra.mrb[6].mxu1 %vm43_vm1, %v667_v37 }
 0x4d1   :  { %3162 = vmatpush3.bf16.msra.mxu1 %v3693_v48  ;;  %2748 = vmatprep.mubr.msk.f32.mxu1 %vm3413_vm0, %v3414_v6 }
 0x4d2   :  { %3163 = vmatprep.subr.bf16.mxu1 %v3412_v3 }
 0x4d5   :  { %3165 = vmatpush3.bf16.msra.mxu1 %v3711_v60 }
 0x4d6   :  { %3166 = vmatprep.subr.bf16.mxu1 %v3412_v3 }
 0x4d9   :  { %3168 = vmatpush3.bf16.msra.mxu1 %v3724_v62 }
 0x4da   :  { %3169 = vmatprep.subr.bf16.mxu1 %v3412_v3 }
 0x4db   :  { %v809_v39 = vpop.f32.mrb[12].mxu0 }
 0x4dc   :  { %v810_v40 = vadd.f32 %v809_v39, %v742_v38  ;;  %v2731_v41 = vpop.f32.mrb[13].mxu0  ;;  %v1622_v38 = vld [vmem:[#allocation2 + $0x30] sm:$0xff] }
 0x4dd   :  { %3171 = vmatpush3.bf16.msra.mxu1 %v3730_v0 }
 0x4de   :  { %3374 = vtanh.f32 %v810_v40  ;;  %3178 = vmatprep.subr.bf16.mxu1 %v3412_v3 }
 0x4e8   :  { %v3375_v42 = vpop.eup %3374 }
 0x4e9   :  { %2749 = vmatmul.mubr.msk.f32.vlgmr.msra.gmra.mrb[8].mxu1 %vm130_vm2, %v3375_v42 }
 0x4ea   :  { %3180 = vmatpush3.bf16.msra.mxu1 %v3584_v52  ;;  %2778 = vmatprep.mubr.msk.f32.mxu1 %vm3413_vm0, %v3414_v6 }
 0x4eb   :  { %3181 = vmatprep.subr.bf16.mxu1 %v3412_v3 }
 0x4ee   :  { %3183 = vmatpush3.bf16.msra.mxu1 %v3593_v55 }
 0x4ef   :  { %3184 = vmatprep.subr.bf16.mxu1 %v3412_v3 }
 0x4f2   :  { %3186 = vmatpush3.bf16.msra.mxu1 %v3633_v11 }
 0x4f3   :  { %3187 = vmatprep.subr.bf16.mxu1 %v3412_v3 }
 0x4f6   :  { %3189 = vmatpush3.bf16.msra.mxu1 %v3644_v15 }
 0x4f7   :  { %3202 = vmatprep.subr.bf16.mxu1 %v3412_v3 }
 0x4f9   :  { %2779 = vmatmul.mubr.msk.f32.vlgmr.msra.gmra.mrb[10].mxu1 %vm130_vm2, %v3375_v42 }
 0x4fa   :  { %3204 = vmatpush3.bf16.msra.mxu1 %v3742_v8  ;;  %2808 = vmatprep.mubr.msk.f32.mxu1 %vm3413_vm0, %v3414_v6 }
 0x4fb   :  { %3205 = vmatprep.subr.bf16.mxu1 %v3412_v3 }
 0x4fe   :  { %3207 = vmatpush3.bf16.msra.mxu1 %v3779_v27 }
 0x4ff   :  { %3220 = vmatprep.subr.bf16.mxu1 %v3412_v3 }
 0x5a3   :  { %v737_v45 = vpop.f32.mrb[6].mxu1 }
 0x5a4   :  { %v738_v47 = vadd.f32 %v737_v45, %v3821_v44  ;;  %v2712_v49 = vpop.f32.mrb[7].mxu1 }
 0x5a6   :  { %741 = vst [vmem:[#allocation3] sm:$0xff] %v738_v47 }
 0x5bc   :  { %v883_v50 = vpop.f32.mrb[8].mxu1 }
 0x5bd   :  { %v884_v51 = vadd.f32 %v883_v50, %v3787_v31  ;;  %v2750_v53 = vpop.f32.mrb[9].mxu1 }
 0x5bf   :  { %v887_v54 = vmax.f32 %v884_v51, 0.0 }
 0x5c1   :  { %2760 = vmatmul.mubr.msk.f32.vlgmr.msra.gmra.mrb[14].mxu0 %vm43_vm1, %v887_v54  ;;  %v1842_v54 = vld [vmem:[#allocation2 + $0x38] sm:$0xff] }
 0x5c2   :  { %3192 = vmatpush3.bf16.msra.mxu0 %v3693_v48  ;;  %2797 = vmatprep.mubr.msk.f32.mxu0 %vm3413_vm0, %v3414_v6 }
 0x5c3   :  { %3193 = vmatprep.subr.bf16.mxu0 %v3412_v3 }
 0x5c6   :  { %3195 = vmatpush3.bf16.msra.mxu0 %v3711_v60 }
 0x5c7   :  { %3196 = vmatprep.subr.bf16.mxu0 %v3412_v3 }
 0x5ca   :  { %3198 = vmatpush3.bf16.msra.mxu0 %v3724_v62 }
 0x5cb   :  { %3199 = vmatprep.subr.bf16.mxu0 %v3412_v3 }
 0x5cc   :  { %v1029_v30 = vpop.f32.mrb[10].mxu1 }
 0x5cd   :  { %v1030_v56 = vadd.f32 %v1029_v30, %v962_v28  ;;  %v2780_v57 = vpop.f32.mrb[11].mxu1 }
 0x5ce   :  { %3201 = vmatpush3.bf16.msra.mxu0 %v3730_v0 }
 0x5cf   :  { %3376 = vtanh.f32 %v1030_v56  ;;  %3208 = vmatprep.subr.bf16.mxu0 %v3412_v3 }
 0x5d9   :  { %v3377_v58 = vpop.eup %3376 }
 0x5da   :  { %2798 = vmatmul.mubr.msk.f32.vlgmr.msra.gmra.mrb[16].mxu0 %vm130_vm2, %v3377_v58 }
 0x5db   :  { %3210 = vmatpush3.bf16.msra.mxu0 %v3584_v52  ;;  %2827 = vmatprep.mubr.msk.f32.mxu0 %vm3413_vm0, %v3414_v6 }
 0x5dc   :  { %3211 = vmatprep.subr.bf16.mxu0 %v3412_v3 }
 0x5df   :  { %3213 = vmatpush3.bf16.msra.mxu0 %v3593_v55 }
 0x5e0   :  { %3214 = vmatprep.subr.bf16.mxu0 %v3412_v3 }
 0x5e3   :  { %3216 = vmatpush3.bf16.msra.mxu0 %v3633_v11 }
 0x5e4   :  { %3217 = vmatprep.subr.bf16.mxu0 %v3412_v3 }
 0x5e7   :  { %3219 = vmatpush3.bf16.msra.mxu0 %v3644_v15 }
 0x5e8   :  { %3232 = vmatprep.subr.bf16.mxu0 %v3412_v3 }
 0x5ea   :  { %2828 = vmatmul.mubr.msk.f32.vlgmr.msra.gmra.mrb[18].mxu0 %vm130_vm2, %v3377_v58 }
 0x5eb   :  { %3234 = vmatpush3.bf16.msra.mxu0 %v3742_v8  ;;  %2857 = vmatprep.mubr.msk.f32.mxu0 %vm3413_vm0, %v3414_v6 }
 0x5ec   :  { %3235 = vmatprep.subr.bf16.mxu0 %v3412_v3 }
 0x5ef   :  { %3237 = vmatpush3.bf16.msra.mxu0 %v3779_v27 }
 0x5f0   :  { %3250 = vmatprep.subr.bf16.mxu0 %v3412_v3 }
 0x694   :  { %v957_v59 = vpop.f32.mrb[14].mxu0 }
 0x695   :  { %v958_v36 = vadd.f32 %v957_v59, %v3821_v44  ;;  %v2761_v46 = vpop.f32.mrb[15].mxu0 }
 0x697   :  { %961 = vst [vmem:[#allocation3 + $0x8] sm:$0xff] %v958_v36 }
 0x6ad   :  { %v1103_v61 = vpop.f32.mrb[16].mxu0 }
 0x6ae   :  { %v1104_v63 = vadd.f32 %v1103_v61, %v3787_v31  ;;  %v2799_v1 = vpop.f32.mrb[17].mxu0 }
 0x6b0   :  { %v1107_v2 = vmax.f32 %v1104_v63, 0.0 }
 0x6b2   :  { %2809 = vmatmul.mubr.msk.f32.vlgmr.msra.gmra.mrb[12].mxu1 %vm43_vm1, %v1107_v2 }
 0x6b3   :  { %3222 = vmatpush3.bf16.msra.mxu1 %v3693_v48  ;;  %2846 = vmatprep.mubr.msk.f32.mxu1 %vm3413_vm0, %v3414_v6 }
 0x6b4   :  { %3223 = vmatprep.subr.bf16.mxu1 %v3412_v3 }
 0x6b7   :  { %3225 = vmatpush3.bf16.msra.mxu1 %v3711_v60 }
 0x6b8   :  { %3226 = vmatprep.subr.bf16.mxu1 %v3412_v3 }
 0x6bb   :  { %3228 = vmatpush3.bf16.msra.mxu1 %v3724_v62 }
 0x6bc   :  { %3229 = vmatprep.subr.bf16.mxu1 %v3412_v3 }
 0x6bd   :  { %v1249_v5 = vpop.f32.mrb[18].mxu0 }
 0x6be   :  { %v1250_v7 = vadd.f32 %v1249_v5, %v1182_v4  ;;  %v2829_v9 = vpop.f32.mrb[19].mxu0 }
 0x6bf   :  { %3231 = vmatpush3.bf16.msra.mxu1 %v3730_v0 }
 0x6c0   :  { %3378 = vtanh.f32 %v1250_v7  ;;  %3238 = vmatprep.subr.bf16.mxu1 %v3412_v3 }
 0x6ca   :  { %v3379_v10 = vpop.eup %3378 }
 0x6cb   :  { %2847 = vmatmul.mubr.msk.f32.vlgmr.msra.gmra.mrb[14].mxu1 %vm130_vm2, %v3379_v10 }
 0x6cc   :  { %3240 = vmatpush3.bf16.msra.mxu1 %v3584_v52  ;;  %2876 = vmatprep.mubr.msk.f32.mxu1 %vm3413_vm0, %v3414_v6 }
 0x6cd   :  { %3241 = vmatprep.subr.bf16.mxu1 %v3412_v3 }
 0x6d0   :  { %3243 = vmatpush3.bf16.msra.mxu1 %v3593_v55 }
 0x6d1   :  { %3244 = vmatprep.subr.bf16.mxu1 %v3412_v3 }
 0x6d4   :  { %3246 = vmatpush3.bf16.msra.mxu1 %v3633_v11 }
 0x6d5   :  { %3247 = vmatprep.subr.bf16.mxu1 %v3412_v3 }
 0x6d8   :  { %3249 = vmatpush3.bf16.msra.mxu1 %v3644_v15 }
 0x6d9   :  { %3262 = vmatprep.subr.bf16.mxu1 %v3412_v3 }
 0x6db   :  { %2877 = vmatmul.mubr.msk.f32.vlgmr.msra.gmra.mrb[16].mxu1 %vm130_vm2, %v3379_v10 }
 0x6dc   :  { %3264 = vmatpush3.bf16.msra.mxu1 %v3742_v8  ;;  %2906 = vmatprep.mubr.msk.f32.mxu1 %vm3413_vm0, %v3414_v6 }
 0x6dd   :  { %3265 = vmatprep.subr.bf16.mxu1 %v3412_v3 }
 0x6e0   :  { %3267 = vmatpush3.bf16.msra.mxu1 %v3779_v27 }
 0x6e1   :  { %3280 = vmatprep.subr.bf16.mxu1 %v3412_v3 }
 0x785   :  { %v1177_v12 = vpop.f32.mrb[12].mxu1 }
 0x786   :  { %v1178_v13 = vadd.f32 %v1177_v12, %v3821_v44  ;;  %v2810_v14 = vpop.f32.mrb[13].mxu1 }
 0x788   :  { %1181 = vst [vmem:[#allocation3 + $0x10] sm:$0xff] %v1178_v13 }
 0x79e   :  { %v1323_v16 = vpop.f32.mrb[14].mxu1 }
 0x79f   :  { %v1324_v17 = vadd.f32 %v1323_v16, %v3787_v31  ;;  %v2848_v18 = vpop.f32.mrb[15].mxu1 }
 0x7a1   :  { %v1327_v19 = vmax.f32 %v1324_v17, 0.0 }
 0x7a3   :  { %2858 = vmatmul.mubr.msk.f32.vlgmr.msra.gmra.mrb[20].mxu0 %vm43_vm1, %v1327_v19 }
 0x7a4   :  { %3252 = vmatpush3.bf16.msra.mxu0 %v3693_v48  ;;  %2895 = vmatprep.mubr.msk.f32.mxu0 %vm3413_vm0, %v3414_v6 }
 0x7a5   :  { %3253 = vmatprep.subr.bf16.mxu0 %v3412_v3 }
 0x7a8   :  { %3255 = vmatpush3.bf16.msra.mxu0 %v3711_v60 }
 0x7a9   :  { %3256 = vmatprep.subr.bf16.mxu0 %v3412_v3 }
 0x7ac   :  { %3258 = vmatpush3.bf16.msra.mxu0 %v3724_v62 }
 0x7ad   :  { %3259 = vmatprep.subr.bf16.mxu0 %v3412_v3 }
 0x7ae   :  { %v1469_v21 = vpop.f32.mrb[16].mxu1 }
 0x7af   :  { %v1470_v22 = vadd.f32 %v1469_v21, %v1402_v20  ;;  %v2878_v23 = vpop.f32.mrb[17].mxu1 }
 0x7b0   :  { %3261 = vmatpush3.bf16.msra.mxu0 %v3730_v0 }
 0x7b1   :  { %3380 = vtanh.f32 %v1470_v22  ;;  %3268 = vmatprep.subr.bf16.mxu0 %v3412_v3 }
 0x7bb   :  { %v3381_v24 = vpop.eup %3380 }
 0x7bc   :  { %2896 = vmatmul.mubr.msk.f32.vlgmr.msra.gmra.mrb[22].mxu0 %vm130_vm2, %v3381_v24 }
 0x7bd   :  { %3270 = vmatpush3.bf16.msra.mxu0 %v3584_v52  ;;  %2925 = vmatprep.mubr.msk.f32.mxu0 %vm3413_vm0, %v3414_v6 }
 0x7be   :  { %3271 = vmatprep.subr.bf16.mxu0 %v3412_v3 }
 0x7c1   :  { %3273 = vmatpush3.bf16.msra.mxu0 %v3593_v55 }
 0x7c2   :  { %3274 = vmatprep.subr.bf16.mxu0 %v3412_v3 }
 0x7c5   :  { %3276 = vmatpush3.bf16.msra.mxu0 %v3633_v11 }
 0x7c6   :  { %3277 = vmatprep.subr.bf16.mxu0 %v3412_v3 }
 0x7c9   :  { %3279 = vmatpush3.bf16.msra.mxu0 %v3644_v15 }
 0x7ca   :  { %3292 = vmatprep.subr.bf16.mxu0 %v3412_v3 }
 0x7cc   :  { %2926 = vmatmul.mubr.msk.f32.vlgmr.msra.gmra.mrb[24].mxu0 %vm130_vm2, %v3381_v24 }
 0x7cd   :  { %3294 = vmatpush3.bf16.msra.mxu0 %v3742_v8  ;;  %2955 = vmatprep.mubr.msk.f32.mxu0 %vm3413_vm0, %v3414_v6 }
 0x7ce   :  { %3295 = vmatprep.subr.bf16.mxu0 %v3412_v3 }
 0x7d1   :  { %3297 = vmatpush3.bf16.msra.mxu0 %v3779_v27 }
 0x7d2   :  { %3310 = vmatprep.subr.bf16.mxu0 %v3412_v3 }
 0x876   :  { %v1397_v25 = vpop.f32.mrb[20].mxu0 }
 0x877   :  { %v1398_v26 = vadd.f32 %v1397_v25, %v3821_v44  ;;  %v2859_v29 = vpop.f32.mrb[21].mxu0 }
 0x879   :  { %1401 = vst [vmem:[#allocation3 + $0x18] sm:$0xff] %v1398_v26 }
 0x88f   :  { %v1543_v32 = vpop.f32.mrb[22].mxu0 }
 0x890   :  { %v1544_v33 = vadd.f32 %v1543_v32, %v3787_v31  ;;  %v2897_v35 = vpop.f32.mrb[23].mxu0 }
 0x892   :  { %v1547_v37 = vmax.f32 %v1544_v33, 0.0 }
 0x894   :  { %2907 = vmatmul.mubr.msk.f32.vlgmr.msra.gmra.mrb[18].mxu1 %vm43_vm1, %v1547_v37 }
 0x895   :  { %3282 = vmatpush3.bf16.msra.mxu1 %v3693_v48  ;;  %2944 = vmatprep.mubr.msk.f32.mxu1 %vm3413_vm0, %v3414_v6 }
 0x896   :  { %3283 = vmatprep.subr.bf16.mxu1 %v3412_v3 }
 0x899   :  { %3285 = vmatpush3.bf16.msra.mxu1 %v3711_v60 }
 0x89a   :  { %3286 = vmatprep.subr.bf16.mxu1 %v3412_v3 }
 0x89d   :  { %3288 = vmatpush3.bf16.msra.mxu1 %v3724_v62 }
 0x89e   :  { %3289 = vmatprep.subr.bf16.mxu1 %v3412_v3 }
 0x89f   :  { %v1689_v39 = vpop.f32.mrb[24].mxu0 }
 0x8a0   :  { %v1690_v40 = vadd.f32 %v1689_v39, %v1622_v38  ;;  %v2927_v41 = vpop.f32.mrb[25].mxu0 }
 0x8a1   :  { %3291 = vmatpush3.bf16.msra.mxu1 %v3730_v0 }
 0x8a2   :  { %3382 = vtanh.f32 %v1690_v40  ;;  %3298 = vmatprep.subr.bf16.mxu1 %v3412_v3 }
 0x8ac   :  { %v3383_v42 = vpop.eup %3382 }
 0x8ad   :  { %2945 = vmatmul.mubr.msk.f32.vlgmr.msra.gmra.mrb[20].mxu1 %vm130_vm2, %v3383_v42 }
 0x8ae   :  { %3300 = vmatpush3.bf16.msra.mxu1 %v3584_v52  ;;  %2974 = vmatprep.mubr.msk.f32.mxu1 %vm3413_vm0, %v3414_v6 }
 0x8af   :  { %3301 = vmatprep.subr.bf16.mxu1 %v3412_v3 }
 0x8b2   :  { %3303 = vmatpush3.bf16.msra.mxu1 %v3593_v55 }
 0x8b3   :  { %3304 = vmatprep.subr.bf16.mxu1 %v3412_v3 }
 0x8b6   :  { %3306 = vmatpush3.bf16.msra.mxu1 %v3633_v11 }
 0x8b7   :  { %3307 = vmatprep.subr.bf16.mxu1 %v3412_v3 }
 0x8ba   :  { %3309 = vmatpush3.bf16.msra.mxu1 %v3644_v15 }
 0x8bb   :  { %3322 = vmatprep.subr.bf16.mxu1 %v3412_v3 }
 0x8bd   :  { %2975 = vmatmul.mubr.msk.f32.vlgmr.msra.gmra.mrb[22].mxu1 %vm130_vm2, %v3383_v42 }
 0x8be   :  { %3324 = vmatpush3.bf16.msra.mxu1 %v3742_v8  ;;  %3004 = vmatprep.mubr.msk.f32.mxu1 %vm3413_vm0, %v3414_v6 }
 0x8bf   :  { %3325 = vmatprep.subr.bf16.mxu1 %v3412_v3 }
 0x8c2   :  { %3327 = vmatpush3.bf16.msra.mxu1 %v3779_v27 }
 0x8c3   :  { %3340 = vmatprep.subr.bf16.mxu1 %v3412_v3 }
 0x967   :  { %v1617_v43 = vpop.f32.mrb[18].mxu1 }
 0x968   :  { %v1618_v45 = vadd.f32 %v1617_v43, %v3821_v44  ;;  %v2908_v47 = vpop.f32.mrb[19].mxu1 }
 0x96a   :  { %1621 = vst [vmem:[#allocation3 + $0x20] sm:$0xff] %v1618_v45 }
 0x980   :  { %v1763_v49 = vpop.f32.mrb[20].mxu1 }
 0x981   :  { %v1764_v50 = vadd.f32 %v1763_v49, %v3787_v31  ;;  %v2946_v51 = vpop.f32.mrb[21].mxu1 }
 0x983   :  { %v1767_v53 = vmax.f32 %v1764_v50, 0.0 }
 0x985   :  { %2956 = vmatmul.mubr.msk.f32.vlgmr.msra.gmra.mrb[26].mxu0 %vm43_vm1, %v1767_v53 }
 0x986   :  { %3312 = vmatpush3.bf16.msra.mxu0 %v3693_v48  ;;  %2993 = vmatprep.mubr.msk.f32.mxu0 %vm3413_vm0, %v3414_v6 }
 0x987   :  { %3313 = vmatprep.subr.bf16.mxu0 %v3412_v3 }
 0x98a   :  { %3315 = vmatpush3.bf16.msra.mxu0 %v3711_v60 }
 0x98b   :  { %3316 = vmatprep.subr.bf16.mxu0 %v3412_v3 }
 0x98e   :  { %3318 = vmatpush3.bf16.msra.mxu0 %v3724_v62 }
 0x98f   :  { %3319 = vmatprep.subr.bf16.mxu0 %v3412_v3 }
 0x990   :  { %v1909_v28 = vpop.f32.mrb[22].mxu1 }
 0x991   :  { %v1910_v30 = vadd.f32 %v1909_v28, %v1842_v54  ;;  %v2976_v56 = vpop.f32.mrb[23].mxu1 }
 0x992   :  { %3321 = vmatpush3.bf16.msra.mxu0 %v3730_v0 }
 0x993   :  { %3384 = vtanh.f32 %v1910_v30  ;;  %3328 = vmatprep.subr.bf16.mxu0 %v3412_v3 }
 0x99d   :  { %v3385_v57 = vpop.eup %3384 }
 0x99e   :  { %2994 = vmatmul.mubr.msk.f32.vlgmr.msra.gmra.mrb[28].mxu0 %vm130_vm2, %v3385_v57 }
 0x99f   :  { %3330 = vmatpush3.bf16.msra.mxu0 %v3584_v52  ;;  %3023 = vmatprep.mubr.msk.f32.mxu0 %vm3413_vm0, %v3414_v6 }
 0x9a0   :  { %3331 = vmatprep.subr.bf16.mxu0 %v3412_v3 }
 0x9a3   :  { %3333 = vmatpush3.bf16.msra.mxu0 %v3593_v55 }
 0x9a4   :  { %3334 = vmatprep.subr.bf16.mxu0 %v3412_v3 }
 0x9a7   :  { %3336 = vmatpush3.bf16.msra.mxu0 %v3633_v11 }
 0x9a8   :  { %3337 = vmatprep.subr.bf16.mxu0 %v3412_v3 }
 0x9ab   :  { %3339 = vmatpush3.bf16.msra.mxu0 %v3644_v15 }
 0x9ac   :  { %3352 = vmatprep.subr.bf16.mxu0 %v3412_v3 }
 0x9ae   :  { %3024 = vmatmul.mubr.msk.f32.vlgmr.msra.gmra.mrb[30].mxu0 %vm130_vm2, %v3385_v57 }
 0x9af   :  { %3354 = vmatpush3.bf16.msra.mxu0 %v3742_v8  ;;  %3053 = vmatprep.mubr.msk.f32.mxu0 %vm3413_vm0, %v3414_v6 }
 0x9b0   :  { %3355 = vmatprep.subr.bf16.mxu0 %v3412_v3 }
 0x9b3   :  { %3357 = vmatpush3.bf16.msra.mxu0 %v3779_v27 }
 0xa58   :  { %v1837_v52 = vpop.f32.mrb[26].mxu0 }
 0xa59   :  { %v1838_v55 = vadd.f32 %v1837_v52, %v3821_v44  ;;  %v2957_v11 = vpop.f32.mrb[27].mxu0 }
 0xa5b   :  { %1841 = vst [vmem:[#allocation3 + $0x28] sm:$0xff] %v1838_v55 }
 0xa71   :  { %v1983_v58 = vpop.f32.mrb[28].mxu0 }
 0xa72   :  { %v1984_v15 = vadd.f32 %v1983_v58, %v3787_v31  ;;  %v2995_v59 = vpop.f32.mrb[29].mxu0 }
 0xa74   :  { %v1987_v36 = vmax.f32 %v1984_v15, 0.0 }
 0xa76   :  { %3005 = vmatmul.mubr.msk.f32.vlgmr.msra.gmra.mrb[24].mxu1 %vm43_vm1, %v1987_v36 }
 0xa77   :  { %3342 = vmatpush3.bf16.msra.mxu1 %v3693_v48  ;;  %3042 = vmatprep.mubr.msk.f32.mxu1 %vm3413_vm0, %v3414_v6 }
 0xa78   :  { %3343 = vmatprep.subr.bf16.mxu1 %v3412_v3 }
 0xa7b   :  { %3345 = vmatpush3.bf16.msra.mxu1 %v3711_v60 }
 0xa7c   :  { %3346 = vmatprep.subr.bf16.mxu1 %v3412_v3 }
 0xa7f   :  { %3348 = vmatpush3.bf16.msra.mxu1 %v3724_v62 }
 0xa80   :  { %3349 = vmatprep.subr.bf16.mxu1 %v3412_v3 }
 0xa81   :  { %v2128_v8 = vpop.f32.mrb[30].mxu0 }
 0xa82   :  { %v2129_v27 = vadd.f32 %v2128_v8, %v3664_v34  ;;  %v3025_v46 = vpop.f32.mrb[31].mxu0 }
 0xa83   :  { %3351 = vmatpush3.bf16.msra.mxu1 %v3730_v0 }
 0xa84   :  { %3386 = vtanh.f32 %v2129_v27 }
 0xa8e   :  { %v3387_v48 = vpop.eup %3386 }
 0xa8f   :  { %3043 = vmatmul.mubr.msk.f32.vlgmr.msra.gmra.mrb[26].mxu1 %vm130_vm2, %v3387_v48 }
 0xb49   :  { %v2057_v6 = vpop.f32.mrb[24].mxu1 }
 0xb4a   :  { %v2058_v61 = vadd.f32 %v2057_v6, %v3821_v44  ;;  %v3006_v60 = vpop.f32.mrb[25].mxu1 }
 0xb4c   :  { %2061 = vst [vmem:[#allocation3 + $0x30] sm:$0xff] %v2058_v61 }
 0xb62   :  { %v2202_v63 = vpop.f32.mrb[26].mxu1 }
 0xb63   :  { %v2203_v62 = vadd.f32 %v2202_v63, %v3787_v31  ;;  %v3044_v1 = vpop.f32.mrb[27].mxu1 }
 0xb65   :  { %v2206_v3 = vmax.f32 %v2203_v62, 0.0 }
 0xb67   :  { %3054 = vmatmul.mubr.msk.f32.vlgmr.msra.gmra.mrb[32].mxu0 %vm43_vm1, %v2206_v3 }
 0xc3a   :  { %v2276_v34 = vpop.f32.mrb[32].mxu0 }
 0xc3b   :  { %v2277_v0 = vadd.f32 %v2276_v34, %v3821_v44  ;;  %v3055_v2 = vpop.f32.mrb[33].mxu0 }
 0xc3d   :  { %2280 = vst [vmem:[#allocation3 + $0x38] sm:$0xff] %v2277_v0 }
 0xc3e   :  { %3399 = shalt.err (!%p3396_p4)
}
 0xc3f   :  { %s3400_s24 = scalar_lea.hbm %s4016_s9, 1024 }
 0xc40   :  { %p3401_p5 = scmp.ne.s32.totalorder %s4016_s9, %s3400_s24  ;;  %p3404_p6 = scmp.lt.u32.totalorder %s3400_s24, %s4016_s9 }
 0xc42   :  { %p3406_p7 = pnand %p3404_p6, %p3401_p5 }
 0xc44   :  { %3409 = shalt.err (!%p3406_p7)
}
 0xc45   :  { %s3420_s0 = smov 128   ;;  %s3421_s29 = smov 8  }
 0xc46   :  { %2292 = dma.vmem_to_hbm [thread:$0]  %s2287_s2, 1024, %s4016_s9, [#allocation4], %s3420_s0, %s3420_s0, %s3421_s29  }
 0xc47   :  { %3410 = dma.done.wait [#allocation4], 1024  }
 0xc48   :  { %3411 = vsyncadd [#allocation4], 4294966272 }
 0xc49   :  { %2296 = vsyncpa [#allocation4], 1 }

</bundles_post_ra>
